<compile_context>
chip_gen: v6e
topology: v6e:2x2x1
jax: 0.10.0
libtpu: 0.0.40
codegen_flags: <defaults>
</compile_context>

<pallas_src>
import functools

import jax
import jax.numpy as jnp
import numpy as np
from jax import lax
from jax.experimental import pallas as pl
from jax.experimental.pallas import tpu as pltpu


def _rnn_kernel(x_ref, h0_ref,
                w_ih0_ref, w_hh0_ref, b0_comb_ref, b_hh0n_ref,
                w_ih1_ref, w_hh1_ref, b_ih1_ref, b_hh1_ref,
                w_lin_ref, b_lin_ref,
                y_ref, state_ref,
                gi0_scratch, h1_scratch,
                *, seq, b_pad, hidden):
    H = hidden
    H2 = 2 * H

    # ---- Off-critical-path: layer-0 input projection for ALL time steps ----
    # (S*B, I) @ (I, 3H) + (b_ih0 + [b_hh0_rz, 0]) -> one big matmul.
    gi0_scratch[...] = (
        jnp.dot(x_ref[...], w_ih0_ref[...], preferred_element_type=jnp.float32)
        + b0_comb_ref[...])

    # ---- Hoist weights / bias broadcasts out of the recurrence ----
    w_hh0 = w_hh0_ref[...]
    w_ih1 = w_ih1_ref[...]
    w_hh1 = w_hh1_ref[...]

    bhh0_n = jnp.broadcast_to(b_hh0n_ref[...], (b_pad, H))      # (B, H)

    b_ih1 = b_ih1_ref[...]                                       # (1, 3H)
    b_hh1 = b_hh1_ref[...]                                       # (1, 3H)
    brz1 = jnp.broadcast_to(b_ih1[:, :H2] + b_hh1[:, :H2], (b_pad, H2))
    bin1 = jnp.broadcast_to(b_ih1[:, H2:], (b_pad, H))
    bhn1 = jnp.broadcast_to(b_hh1[:, H2:], (b_pad, H))

    h0_init = h0_ref[0]                                          # (B, H)
    h1_init = h0_ref[1]                                          # (B, H)

    # ---- Serial recurrence: 3 MXU calls per step (gh0, gi1, gh1) ----
    def step(t, carry):
        h0, h1 = carry
        base = pl.multiple_of(t * b_pad, b_pad)

        # Layer 0 (PyTorch GRU semantics; gate order r, z, n).
        gi0 = gi0_scratch[pl.ds(base, b_pad), :]        # incl. b_ih0 + b_hh0_rz
        gh0 = jnp.dot(h0, w_hh0, preferred_element_type=jnp.float32)
        rz0 = jax.nn.sigmoid(gi0[:, :H2] + gh0[:, :H2])
        r0, z0 = rz0[:, :H], rz0[:, H:]
        n0 = jnp.tanh(gi0[:, H2:] + r0 * (gh0[:, H2:] + bhh0_n))
        h0n = (1.0 - z0) * n0 + z0 * h0

        # Layer 1.
        gi1 = jnp.dot(h0n, w_ih1, preferred_element_type=jnp.float32)
        gh1 = jnp.dot(h1, w_hh1, preferred_element_type=jnp.float32)
        rz1 = jax.nn.sigmoid(gi1[:, :H2] + gh1[:, :H2] + brz1)
        r1, z1 = rz1[:, :H], rz1[:, H:]
        n1 = jnp.tanh(gi1[:, H2:] + bin1 + r1 * (gh1[:, H2:] + bhn1))
        h1n = (1.0 - z1) * n1 + z1 * h1

        # Stash top-layer output; the output Linear runs after the loop.
        h1_scratch[pl.ds(base, b_pad), :] = h1n
        return (h0n, h1n)

    h0_f, h1_f = lax.fori_loop(0, seq, step, (h0_init, h1_init), unroll=True)

    state_ref[0] = h0_f.astype(state_ref.dtype)
    state_ref[1] = h1_f.astype(state_ref.dtype)

    # ---- Off-critical-path: output Linear as one lane-dense matmul ----
    # (S*B, H) @ (H, O_pad=128) -> unmasked 128-lane stores.
    y_ref[...] = (jnp.dot(h1_scratch[...], w_lin_ref[...],
                          preferred_element_type=jnp.float32)
                  + b_lin_ref[...]).astype(y_ref.dtype)


def rnn_model_forward(inputs, state, params):
    """inputs: (S, B, I) f32 (time-major, like nn.GRU default),
    state: (2, B, H) f32.

    Returns (out, state_new) with out: (B, S, O), state_new: (2, B, H),
    matching RNNModel.forward semantics.
    """
    S, B, I = inputs.shape
    H = params["w_hh0"].shape[0]            # (H, 3H)
    O = params["w_lin"].shape[1]            # (H, O)

    B_pad = ((B + 7) // 8) * 8              # full sublane rows
    O_pad = ((O + 127) // 128) * 128        # lane-dense output slab

    x_pad = jnp.pad(inputs, ((0, 0), (0, B_pad - B), (0, 0)))
    st_pad = jnp.pad(state, ((0, 0), (0, B_pad - B), (0, 0)))
    w_lin_pad = jnp.pad(params["w_lin"], ((0, 0), (0, O_pad - O)))
    b_lin_pad = jnp.pad(params["b_lin"], ((0, 0), (0, O_pad - O)))

    # Pre-fold the r/z part of b_hh0 into the precomputed layer-0 bias so the
    # recurrence has no layer-0 bias add on the r/z path.
    b0_comb = params["b_ih0"] + jnp.concatenate(
        [params["b_hh0"][:, :2 * H], jnp.zeros((1, H), jnp.float32)], axis=1)
    b_hh0_n = params["b_hh0"][:, 2 * H:]                      # (1, H)

    x2d = x_pad.reshape(S * B_pad, I)       # (S*B_pad, I)

    kernel = functools.partial(_rnn_kernel, seq=S, b_pad=B_pad, hidden=H)
    vmem = pl.BlockSpec(memory_space=pltpu.MemorySpace.VMEM)

    y2d, state_new = pl.pallas_call(
        kernel,
        out_shape=(
            jax.ShapeDtypeStruct((S * B_pad, O_pad), jnp.float32),
            jax.ShapeDtypeStruct((2, B_pad, H), jnp.float32),
        ),
        in_specs=[vmem] * 12,
        out_specs=(vmem, vmem),
        scratch_shapes=[
            pltpu.VMEM((S * B_pad, 3 * H), jnp.float32),   # precomputed gi0
            pltpu.VMEM((S * B_pad, H), jnp.float32),       # h1 sequence
        ],
    )(x2d, st_pad,
      params["w_ih0"], params["w_hh0"], b0_comb, b_hh0_n,
      params["w_ih1"], params["w_hh1"], params["b_ih1"], params["b_hh1"],
      w_lin_pad, b_lin_pad)

    y = y2d.reshape(S, B_pad, O_pad)[:, :B, :O]       # (S, B, O)
    out = jnp.transpose(y, (1, 0, 2))                 # Y.transpose(0, 1)
    return out, state_new[:, :B, :]


def _reference_forward(inputs, state, params):
    """Pure-JAX reference of nn.GRU(2 layers) + Linear, for validation."""

    def cell(x, h, w_ih, w_hh, b_ih, b_hh):
        gi = x @ w_ih + b_ih
        gh = h @ w_hh + b_hh
        i_r, i_z, i_n = jnp.split(gi, 3, axis=-1)
        h_r, h_z, h_n = jnp.split(gh, 3, axis=-1)
        r = jax.nn.sigmoid(i_r + h_r)
        z = jax.nn.sigmoid(i_z + h_z)
        n = jnp.tanh(i_n + r * h_n)
        return (1.0 - z) * n + z * h

    def step(carry, x_t):
        h0, h1 = carry
        h0 = cell(x_t, h0, params["w_ih0"], params["w_hh0"],
                  params["b_ih0"][0], params["b_hh0"][0])
        h1 = cell(h0, h1, params["w_ih1"], params["w_hh1"],
                  params["b_ih1"][0], params["b_hh1"][0])
        y = h1 @ params["w_lin"] + params["b_lin"][0]
        return (h0, h1), y

    (h0, h1), ys = jax.lax.scan(step, (state[0], state[1]), inputs)
    out = jnp.transpose(ys, (1, 0, 2))
    return out, jnp.stack([h0, h1], axis=0)


def init_params(key, input_size, hidden, output_size):
    """Deterministic init, PyTorch-style U(-1/sqrt(H), 1/sqrt(H)).

    Weights stored pre-transposed (in_features, out_features) for x @ W.
    Biases stored as (1, features) for clean TPU layout / broadcasting.
    """
    bound = 1.0 / np.sqrt(hidden)
    ks = jax.random.split(key, 12)
    u = lambda k, shape: jax.random.uniform(k, shape, jnp.float32, -bound, bound)
    return {
        "w_ih0": u(ks[0], (input_size, 3 * hidden)),
        "w_hh0": u(ks[1], (hidden, 3 * hidden)),
        "b_ih0": u(ks[2], (1, 3 * hidden)),
        "b_hh0": u(ks[3], (1, 3 * hidden)),
        "w_ih1": u(ks[4], (hidden, 3 * hidden)),
        "w_hh1": u(ks[5], (hidden, 3 * hidden)),
        "b_ih1": u(ks[6], (1, 3 * hidden)),
        "b_hh1": u(ks[7], (1, 3 * hidden)),
        "w_lin": u(ks[8], (hidden, output_size)),
        "b_lin": u(ks[9], (1, output_size)),
    }


if __name__ == "__main__":
    SEQ, BATCH, INPUT, HIDDEN, OUTPUT = 8, 2, 16, 32, 10

    key = jax.random.PRNGKey(0)
    k_p, k_x = jax.random.split(key)
    params = init_params(k_p, INPUT, HIDDEN, OUTPUT)

    inputs = jax.random.normal(k_x, (SEQ, BATCH, INPUT), jnp.float32)
    # begin_state: zeros of shape (num_directions * num_layers, batch, hidden)
    state0 = jnp.zeros((2, BATCH, HIDDEN), jnp.float32)

    fwd = jax.jit(rnn_model_forward)
    out, state = jax.block_until_ready(fwd(inputs, state0, params))

    ref_out, ref_state = _reference_forward(inputs, state0, params)
    np.testing.assert_allclose(np.asarray(out), np.asarray(ref_out),
                               rtol=1e-5, atol=1e-5)
    np.testing.assert_allclose(np.asarray(state), np.asarray(ref_state),
                               rtol=1e-5, atol=1e-5)

    assert out.shape == (BATCH, SEQ, OUTPUT)
    assert state.shape == (2, BATCH, HIDDEN)
    print("KERNEL_OK")
</pallas_src>

<mosaic_0001>
module attributes {stable_mosaic.version = 11 : i64} {
  func.func @_rnn_kernel(%arg0: memref<64x16xf32, #tpu.memory_space<vmem>>, %arg1: memref<2x8x32xf32, #tpu.memory_space<vmem>>, %arg2: memref<16x96xf32, #tpu.memory_space<vmem>>, %arg3: memref<32x96xf32, #tpu.memory_space<vmem>>, %arg4: memref<1x96xf32, #tpu.memory_space<vmem>>, %arg5: memref<1x32xf32, #tpu.memory_space<vmem>>, %arg6: memref<32x96xf32, #tpu.memory_space<vmem>>, %arg7: memref<32x96xf32, #tpu.memory_space<vmem>>, %arg8: memref<1x96xf32, #tpu.memory_space<vmem>>, %arg9: memref<1x96xf32, #tpu.memory_space<vmem>>, %arg10: memref<32x128xf32, #tpu.memory_space<vmem>>, %arg11: memref<1x128xf32, #tpu.memory_space<vmem>>, %arg12: memref<64x128xf32, #tpu.memory_space<vmem>>, %arg13: memref<2x8x32xf32, #tpu.memory_space<vmem>>, %arg14: memref<64x96xf32, #tpu.memory_space<vmem>>, %arg15: memref<64x32xf32, #tpu.memory_space<vmem>>) attributes {dimension_semantics = [], scalar_prefetch = 0 : i64, scratch_operands = 2 : i64, tpu.core_type = #tpu.core_type<tc>} {
    %c0 = arith.constant 0 : index
    %c0_0 = arith.constant 0 : index
    %0 = vector.load %arg0[%c0, %c0_0] : memref<64x16xf32, #tpu.memory_space<vmem>>, vector<64x16xf32>
    %c0_1 = arith.constant 0 : index
    %c0_2 = arith.constant 0 : index
    %1 = vector.load %arg2[%c0_1, %c0_2] : memref<16x96xf32, #tpu.memory_space<vmem>>, vector<16x96xf32>
    %cst = arith.constant dense<0.000000e+00> : vector<64x96xf32>
    %2 = tpu.matmul %0, %1, %cst {dimension_numbers = #tpu.dot_dimension_numbers<[1], [0], [0], [1], [0, 0, 1, 1], [], []>} : vector<64x16xf32>, vector<16x96xf32>, vector<64x96xf32> -> vector<64x96xf32>
    %c0_3 = arith.constant 0 : index
    %c0_4 = arith.constant 0 : index
    %3 = vector.load %arg4[%c0_3, %c0_4] : memref<1x96xf32, #tpu.memory_space<vmem>>, vector<1x96xf32>
    %4 = vector.broadcast %3 : vector<1x96xf32> to vector<64x96xf32>
    %5 = arith.addf %2, %4 : vector<64x96xf32>
    %c0_5 = arith.constant 0 : index
    %c0_6 = arith.constant 0 : index
    %6 = vector.load %arg14[%c0_5, %c0_6] : memref<64x96xf32, #tpu.memory_space<vmem>>, vector<64x96xf32>
    tpu.vector_store %arg14[%c0_5, %c0_6], %5 {strides = array<i32>} : memref<64x96xf32, #tpu.memory_space<vmem>>, vector<64x96xf32>,
    %c0_7 = arith.constant 0 : index
    %c0_8 = arith.constant 0 : index
    %7 = vector.load %arg3[%c0_7, %c0_8] : memref<32x96xf32, #tpu.memory_space<vmem>>, vector<32x96xf32>
    %c0_9 = arith.constant 0 : index
    %c0_10 = arith.constant 0 : index
    %8 = vector.load %arg6[%c0_9, %c0_10] : memref<32x96xf32, #tpu.memory_space<vmem>>, vector<32x96xf32>
    %c0_11 = arith.constant 0 : index
    %c0_12 = arith.constant 0 : index
    %9 = vector.load %arg7[%c0_11, %c0_12] : memref<32x96xf32, #tpu.memory_space<vmem>>, vector<32x96xf32>
    %c0_13 = arith.constant 0 : index
    %c0_14 = arith.constant 0 : index
    %10 = vector.load %arg5[%c0_13, %c0_14] : memref<1x32xf32, #tpu.memory_space<vmem>>, vector<1x32xf32>
    %11 = vector.shape_cast %10 : vector<1x32xf32> to vector<1x32xf32>
    %12 = vector.broadcast %11 : vector<1x32xf32> to vector<8x32xf32>
    %c0_15 = arith.constant 0 : index
    %c0_16 = arith.constant 0 : index
    %13 = vector.load %arg8[%c0_15, %c0_16] : memref<1x96xf32, #tpu.memory_space<vmem>>, vector<1x96xf32>
    %c0_17 = arith.constant 0 : index
    %c0_18 = arith.constant 0 : index
    %14 = vector.load %arg9[%c0_17, %c0_18] : memref<1x96xf32, #tpu.memory_space<vmem>>, vector<1x96xf32>
    %15 = vector.extract_strided_slice %13 {offsets = [0, 0], sizes = [1, 64], strides = [1, 1]} : vector<1x96xf32> to vector<1x64xf32>
    %16 = vector.extract_strided_slice %14 {offsets = [0, 0], sizes = [1, 64], strides = [1, 1]} : vector<1x96xf32> to vector<1x64xf32>
    %17 = arith.addf %15, %16 : vector<1x64xf32>
    %18 = vector.shape_cast %17 : vector<1x64xf32> to vector<1x64xf32>
    %19 = vector.broadcast %18 : vector<1x64xf32> to vector<8x64xf32>
    %20 = vector.extract_strided_slice %13 {offsets = [0, 64], sizes = [1, 32], strides = [1, 1]} : vector<1x96xf32> to vector<1x32xf32>
    %21 = vector.shape_cast %20 : vector<1x32xf32> to vector<1x32xf32>
    %22 = vector.broadcast %21 : vector<1x32xf32> to vector<8x32xf32>
    %23 = vector.extract_strided_slice %14 {offsets = [0, 64], sizes = [1, 32], strides = [1, 1]} : vector<1x96xf32> to vector<1x32xf32>
    %24 = vector.shape_cast %23 : vector<1x32xf32> to vector<1x32xf32>
    %25 = vector.broadcast %24 : vector<1x32xf32> to vector<8x32xf32>
    %c0_19 = arith.constant 0 : index
    %c0_20 = arith.constant 0 : index
    %c0_21 = arith.constant 0 : index
    %26 = vector.load %arg1[%c0_19, %c0_20, %c0_21] : memref<2x8x32xf32, #tpu.memory_space<vmem>>, vector<1x8x32xf32>
    %27 = vector.shape_cast %26 : vector<1x8x32xf32> to vector<8x32xf32>
    %c1 = arith.constant 1 : index
    %c0_22 = arith.constant 0 : index
    %c0_23 = arith.constant 0 : index
    %28 = vector.load %arg1[%c1, %c0_22, %c0_23] : memref<2x8x32xf32, #tpu.memory_space<vmem>>, vector<1x8x32xf32>
    %29 = vector.shape_cast %28 : vector<1x8x32xf32> to vector<8x32xf32>
    %c0_i32 = arith.constant 0 : i32
    %c8_i32 = arith.constant 8 : i32
    %30 = arith.muli %c0_i32, %c8_i32 : i32
    %31 = tpu.assume_multiple %30, 8 : i32
    %32 = arith.index_cast %31 : i32 to index
    %c0_24 = arith.constant 0 : index
    %33 = vector.load %arg14[%32, %c0_24] : memref<64x96xf32, #tpu.memory_space<vmem>>, vector<8x96xf32>
    %cst_25 = arith.constant dense<0.000000e+00> : vector<8x96xf32>
    %34 = tpu.matmul %27, %7, %cst_25 {dimension_numbers = #tpu.dot_dimension_numbers<[1], [0], [0], [1], [0, 0, 1, 1], [], []>} : vector<8x32xf32>, vector<32x96xf32>, vector<8x96xf32> -> vector<8x96xf32>
    %35 = vector.extract_strided_slice %33 {offsets = [0, 0], sizes = [8, 64], strides = [1, 1]} : vector<8x96xf32> to vector<8x64xf32>
    %36 = vector.extract_strided_slice %34 {offsets = [0, 0], sizes = [8, 64], strides = [1, 1]} : vector<8x96xf32> to vector<8x64xf32>
    %37 = arith.addf %35, %36 : vector<8x64xf32>
    %38 = arith.negf %37 : vector<8x64xf32>
    %39 = math.exp %38 : vector<8x64xf32>
    %cst_26 = arith.constant 1.000000e+00 : f32
    %40 = vector.broadcast %cst_26 : f32 to vector<8x64xf32>
    %41 = arith.addf %40, %39 : vector<8x64xf32>
    %42 = arith.divf %40, %41 : vector<8x64xf32>
    %43 = vector.extract_strided_slice %42 {offsets = [0, 0], sizes = [8, 32], strides = [1, 1]} : vector<8x64xf32> to vector<8x32xf32>
    %44 = vector.extract_strided_slice %42 {offsets = [0, 32], sizes = [8, 32], strides = [1, 1]} : vector<8x64xf32> to vector<8x32xf32>
    %45 = vector.extract_strided_slice %33 {offsets = [0, 64], sizes = [8, 32], strides = [1, 1]} : vector<8x96xf32> to vector<8x32xf32>
    %46 = vector.extract_strided_slice %34 {offsets = [0, 64], sizes = [8, 32], strides = [1, 1]} : vector<8x96xf32> to vector<8x32xf32>
    %47 = arith.addf %46, %12 : vector<8x32xf32>
    %48 = arith.mulf %43, %47 : vector<8x32xf32>
    %49 = arith.addf %45, %48 : vector<8x32xf32>
    %50 = math.tanh %49 : vector<8x32xf32>
    %cst_27 = arith.constant 1.000000e+00 : f32
    %51 = vector.broadcast %cst_27 : f32 to vector<8x32xf32>
    %52 = arith.subf %51, %44 : vector<8x32xf32>
    %53 = arith.mulf %52, %50 : vector<8x32xf32>
    %54 = arith.mulf %44, %27 : vector<8x32xf32>
    %55 = arith.addf %53, %54 : vector<8x32xf32>
    %cst_28 = arith.constant dense<0.000000e+00> : vector<8x96xf32>
    %56 = tpu.matmul %55, %8, %cst_28 {dimension_numbers = #tpu.dot_dimension_numbers<[1], [0], [0], [1], [0, 0, 1, 1], [], []>} : vector<8x32xf32>, vector<32x96xf32>, vector<8x96xf32> -> vector<8x96xf32>
    %cst_29 = arith.constant dense<0.000000e+00> : vector<8x96xf32>
    %57 = tpu.matmul %29, %9, %cst_29 {dimension_numbers = #tpu.dot_dimension_numbers<[1], [0], [0], [1], [0, 0, 1, 1], [], []>} : vector<8x32xf32>, vector<32x96xf32>, vector<8x96xf32> -> vector<8x96xf32>
    %58 = vector.extract_strided_slice %56 {offsets = [0, 0], sizes = [8, 64], strides = [1, 1]} : vector<8x96xf32> to vector<8x64xf32>
    %59 = vector.extract_strided_slice %57 {offsets = [0, 0], sizes = [8, 64], strides = [1, 1]} : vector<8x96xf32> to vector<8x64xf32>
    %60 = arith.addf %58, %59 : vector<8x64xf32>
    %61 = arith.addf %60, %19 : vector<8x64xf32>
    %62 = arith.negf %61 : vector<8x64xf32>
    %63 = math.exp %62 : vector<8x64xf32>
    %cst_30 = arith.constant 1.000000e+00 : f32
    %64 = vector.broadcast %cst_30 : f32 to vector<8x64xf32>
    %65 = arith.addf %64, %63 : vector<8x64xf32>
    %66 = arith.divf %64, %65 : vector<8x64xf32>
    %67 = vector.extract_strided_slice %66 {offsets = [0, 0], sizes = [8, 32], strides = [1, 1]} : vector<8x64xf32> to vector<8x32xf32>
    %68 = vector.extract_strided_slice %66 {offsets = [0, 32], sizes = [8, 32], strides = [1, 1]} : vector<8x64xf32> to vector<8x32xf32>
    %69 = vector.extract_strided_slice %56 {offsets = [0, 64], sizes = [8, 32], strides = [1, 1]} : vector<8x96xf32> to vector<8x32xf32>
    %70 = arith.addf %69, %22 : vector<8x32xf32>
    %71 = vector.extract_strided_slice %57 {offsets = [0, 64], sizes = [8, 32], strides = [1, 1]} : vector<8x96xf32> to vector<8x32xf32>
    %72 = arith.addf %71, %25 : vector<8x32xf32>
    %73 = arith.mulf %67, %72 : vector<8x32xf32>
    %74 = arith.addf %70, %73 : vector<8x32xf32>
    %75 = math.tanh %74 : vector<8x32xf32>
    %cst_31 = arith.constant 1.000000e+00 : f32
    %76 = vector.broadcast %cst_31 : f32 to vector<8x32xf32>
    %77 = arith.subf %76, %68 : vector<8x32xf32>
    %78 = arith.mulf %77, %75 : vector<8x32xf32>
    %79 = arith.mulf %68, %29 : vector<8x32xf32>
    %80 = arith.addf %78, %79 : vector<8x32xf32>
    %81 = arith.index_cast %31 : i32 to index
    %c0_32 = arith.constant 0 : index
    %82 = vector.load %arg15[%81, %c0_32] : memref<64x32xf32, #tpu.memory_space<vmem>>, vector<8x32xf32>
    tpu.vector_store %arg15[%81, %c0_32], %80 {strides = array<i32>} : memref<64x32xf32, #tpu.memory_space<vmem>>, vector<8x32xf32>,
    %c1_i32 = arith.constant 1 : i32
    %c8_i32_33 = arith.constant 8 : i32
    %83 = arith.muli %c1_i32, %c8_i32_33 : i32
    %84 = tpu.assume_multiple %83, 8 : i32
    %85 = arith.index_cast %84 : i32 to index
    %c0_34 = arith.constant 0 : index
    %86 = vector.load %arg14[%85, %c0_34] : memref<64x96xf32, #tpu.memory_space<vmem>>, vector<8x96xf32>
    %cst_35 = arith.constant dense<0.000000e+00> : vector<8x96xf32>
    %87 = tpu.matmul %55, %7, %cst_35 {dimension_numbers = #tpu.dot_dimension_numbers<[1], [0], [0], [1], [0, 0, 1, 1], [], []>} : vector<8x32xf32>, vector<32x96xf32>, vector<8x96xf32> -> vector<8x96xf32>
    %88 = vector.extract_strided_slice %86 {offsets = [0, 0], sizes = [8, 64], strides = [1, 1]} : vector<8x96xf32> to vector<8x64xf32>
    %89 = vector.extract_strided_slice %87 {offsets = [0, 0], sizes = [8, 64], strides = [1, 1]} : vector<8x96xf32> to vector<8x64xf32>
    %90 = arith.addf %88, %89 : vector<8x64xf32>
    %91 = arith.negf %90 : vector<8x64xf32>
    %92 = math.exp %91 : vector<8x64xf32>
    %cst_36 = arith.constant 1.000000e+00 : f32
    %93 = vector.broadcast %cst_36 : f32 to vector<8x64xf32>
    %94 = arith.addf %93, %92 : vector<8x64xf32>
    %95 = arith.divf %93, %94 : vector<8x64xf32>
    %96 = vector.extract_strided_slice %95 {offsets = [0, 0], sizes = [8, 32], strides = [1, 1]} : vector<8x64xf32> to vector<8x32xf32>
    %97 = vector.extract_strided_slice %95 {offsets = [0, 32], sizes = [8, 32], strides = [1, 1]} : vector<8x64xf32> to vector<8x32xf32>
    %98 = vector.extract_strided_slice %86 {offsets = [0, 64], sizes = [8, 32], strides = [1, 1]} : vector<8x96xf32> to vector<8x32xf32>
    %99 = vector.extract_strided_slice %87 {offsets = [0, 64], sizes = [8, 32], strides = [1, 1]} : vector<8x96xf32> to vector<8x32xf32>
    %100 = arith.addf %99, %12 : vector<8x32xf32>
    %101 = arith.mulf %96, %100 : vector<8x32xf32>
    %102 = arith.addf %98, %101 : vector<8x32xf32>
    %103 = math.tanh %102 : vector<8x32xf32>
    %cst_37 = arith.constant 1.000000e+00 : f32
    %104 = vector.broadcast %cst_37 : f32 to vector<8x32xf32>
    %105 = arith.subf %104, %97 : vector<8x32xf32>
    %106 = arith.mulf %105, %103 : vector<8x32xf32>
    %107 = arith.mulf %97, %55 : vector<8x32xf32>
    %108 = arith.addf %106, %107 : vector<8x32xf32>
    %cst_38 = arith.constant dense<0.000000e+00> : vector<8x96xf32>
    %109 = tpu.matmul %108, %8, %cst_38 {dimension_numbers = #tpu.dot_dimension_numbers<[1], [0], [0], [1], [0, 0, 1, 1], [], []>} : vector<8x32xf32>, vector<32x96xf32>, vector<8x96xf32> -> vector<8x96xf32>
    %cst_39 = arith.constant dense<0.000000e+00> : vector<8x96xf32>
    %110 = tpu.matmul %80, %9, %cst_39 {dimension_numbers = #tpu.dot_dimension_numbers<[1], [0], [0], [1], [0, 0, 1, 1], [], []>} : vector<8x32xf32>, vector<32x96xf32>, vector<8x96xf32> -> vector<8x96xf32>
    %111 = vector.extract_strided_slice %109 {offsets = [0, 0], sizes = [8, 64], strides = [1, 1]} : vector<8x96xf32> to vector<8x64xf32>
    %112 = vector.extract_strided_slice %110 {offsets = [0, 0], sizes = [8, 64], strides = [1, 1]} : vector<8x96xf32> to vector<8x64xf32>
    %113 = arith.addf %111, %112 : vector<8x64xf32>
    %114 = arith.addf %113, %19 : vector<8x64xf32>
    %115 = arith.negf %114 : vector<8x64xf32>
    %116 = math.exp %115 : vector<8x64xf32>
    %cst_40 = arith.constant 1.000000e+00 : f32
    %117 = vector.broadcast %cst_40 : f32 to vector<8x64xf32>
    %118 = arith.addf %117, %116 : vector<8x64xf32>
    %119 = arith.divf %117, %118 : vector<8x64xf32>
    %120 = vector.extract_strided_slice %119 {offsets = [0, 0], sizes = [8, 32], strides = [1, 1]} : vector<8x64xf32> to vector<8x32xf32>
    %121 = vector.extract_strided_slice %119 {offsets = [0, 32], sizes = [8, 32], strides = [1, 1]} : vector<8x64xf32> to vector<8x32xf32>
    %122 = vector.extract_strided_slice %109 {offsets = [0, 64], sizes = [8, 32], strides = [1, 1]} : vector<8x96xf32> to vector<8x32xf32>
    %123 = arith.addf %122, %22 : vector<8x32xf32>
    %124 = vector.extract_strided_slice %110 {offsets = [0, 64], sizes = [8, 32], strides = [1, 1]} : vector<8x96xf32> to vector<8x32xf32>
    %125 = arith.addf %124, %25 : vector<8x32xf32>
    %126 = arith.mulf %120, %125 : vector<8x32xf32>
    %127 = arith.addf %123, %126 : vector<8x32xf32>
    %128 = math.tanh %127 : vector<8x32xf32>
    %cst_41 = arith.constant 1.000000e+00 : f32
    %129 = vector.broadcast %cst_41 : f32 to vector<8x32xf32>
    %130 = arith.subf %129, %121 : vector<8x32xf32>
    %131 = arith.mulf %130, %128 : vector<8x32xf32>
    %132 = arith.mulf %121, %80 : vector<8x32xf32>
    %133 = arith.addf %131, %132 : vector<8x32xf32>
    %134 = arith.index_cast %84 : i32 to index
    %c0_42 = arith.constant 0 : index
    %135 = vector.load %arg15[%134, %c0_42] : memref<64x32xf32, #tpu.memory_space<vmem>>, vector<8x32xf32>
    tpu.vector_store %arg15[%134, %c0_42], %133 {strides = array<i32>} : memref<64x32xf32, #tpu.memory_space<vmem>>, vector<8x32xf32>,
    %c2_i32 = arith.constant 2 : i32
    %c8_i32_43 = arith.constant 8 : i32
    %136 = arith.muli %c2_i32, %c8_i32_43 : i32
    %137 = tpu.assume_multiple %136, 8 : i32
    %138 = arith.index_cast %137 : i32 to index
    %c0_44 = arith.constant 0 : index
    %139 = vector.load %arg14[%138, %c0_44] : memref<64x96xf32, #tpu.memory_space<vmem>>, vector<8x96xf32>
    %cst_45 = arith.constant dense<0.000000e+00> : vector<8x96xf32>
    %140 = tpu.matmul %108, %7, %cst_45 {dimension_numbers = #tpu.dot_dimension_numbers<[1], [0], [0], [1], [0, 0, 1, 1], [], []>} : vector<8x32xf32>, vector<32x96xf32>, vector<8x96xf32> -> vector<8x96xf32>
    %141 = vector.extract_strided_slice %139 {offsets = [0, 0], sizes = [8, 64], strides = [1, 1]} : vector<8x96xf32> to vector<8x64xf32>
    %142 = vector.extract_strided_slice %140 {offsets = [0, 0], sizes = [8, 64], strides = [1, 1]} : vector<8x96xf32> to vector<8x64xf32>
    %143 = arith.addf %141, %142 : vector<8x64xf32>
    %144 = arith.negf %143 : vector<8x64xf32>
    %145 = math.exp %144 : vector<8x64xf32>
    %cst_46 = arith.constant 1.000000e+00 : f32
    %146 = vector.broadcast %cst_46 : f32 to vector<8x64xf32>
    %147 = arith.addf %146, %145 : vector<8x64xf32>
    %148 = arith.divf %146, %147 : vector<8x64xf32>
    %149 = vector.extract_strided_slice %148 {offsets = [0, 0], sizes = [8, 32], strides = [1, 1]} : vector<8x64xf32> to vector<8x32xf32>
    %150 = vector.extract_strided_slice %148 {offsets = [0, 32], sizes = [8, 32], strides = [1, 1]} : vector<8x64xf32> to vector<8x32xf32>
    %151 = vector.extract_strided_slice %139 {offsets = [0, 64], sizes = [8, 32], strides = [1, 1]} : vector<8x96xf32> to vector<8x32xf32>
    %152 = vector.extract_strided_slice %140 {offsets = [0, 64], sizes = [8, 32], strides = [1, 1]} : vector<8x96xf32> to vector<8x32xf32>
    %153 = arith.addf %152, %12 : vector<8x32xf32>
    %154 = arith.mulf %149, %153 : vector<8x32xf32>
    %155 = arith.addf %151, %154 : vector<8x32xf32>
    %156 = math.tanh %155 : vector<8x32xf32>
    %cst_47 = arith.constant 1.000000e+00 : f32
    %157 = vector.broadcast %cst_47 : f32 to vector<8x32xf32>
    %158 = arith.subf %157, %150 : vector<8x32xf32>
    %159 = arith.mulf %158, %156 : vector<8x32xf32>
    %160 = arith.mulf %150, %108 : vector<8x32xf32>
    %161 = arith.addf %159, %160 : vector<8x32xf32>
    %cst_48 = arith.constant dense<0.000000e+00> : vector<8x96xf32>
    %162 = tpu.matmul %161, %8, %cst_48 {dimension_numbers = #tpu.dot_dimension_numbers<[1], [0], [0], [1], [0, 0, 1, 1], [], []>} : vector<8x32xf32>, vector<32x96xf32>, vector<8x96xf32> -> vector<8x96xf32>
    %cst_49 = arith.constant dense<0.000000e+00> : vector<8x96xf32>
    %163 = tpu.matmul %133, %9, %cst_49 {dimension_numbers = #tpu.dot_dimension_numbers<[1], [0], [0], [1], [0, 0, 1, 1], [], []>} : vector<8x32xf32>, vector<32x96xf32>, vector<8x96xf32> -> vector<8x96xf32>
    %164 = vector.extract_strided_slice %162 {offsets = [0, 0], sizes = [8, 64], strides = [1, 1]} : vector<8x96xf32> to vector<8x64xf32>
    %165 = vector.extract_strided_slice %163 {offsets = [0, 0], sizes = [8, 64], strides = [1, 1]} : vector<8x96xf32> to vector<8x64xf32>
    %166 = arith.addf %164, %165 : vector<8x64xf32>
    %167 = arith.addf %166, %19 : vector<8x64xf32>
    %168 = arith.negf %167 : vector<8x64xf32>
    %169 = math.exp %168 : vector<8x64xf32>
    %cst_50 = arith.constant 1.000000e+00 : f32
    %170 = vector.broadcast %cst_50 : f32 to vector<8x64xf32>
    %171 = arith.addf %170, %169 : vector<8x64xf32>
    %172 = arith.divf %170, %171 : vector<8x64xf32>
    %173 = vector.extract_strided_slice %172 {offsets = [0, 0], sizes = [8, 32], strides = [1, 1]} : vector<8x64xf32> to vector<8x32xf32>
    %174 = vector.extract_strided_slice %172 {offsets = [0, 32], sizes = [8, 32], strides = [1, 1]} : vector<8x64xf32> to vector<8x32xf32>
    %175 = vector.extract_strided_slice %162 {offsets = [0, 64], sizes = [8, 32], strides = [1, 1]} : vector<8x96xf32> to vector<8x32xf32>
    %176 = arith.addf %175, %22 : vector<8x32xf32>
    %177 = vector.extract_strided_slice %163 {offsets = [0, 64], sizes = [8, 32], strides = [1, 1]} : vector<8x96xf32> to vector<8x32xf32>
    %178 = arith.addf %177, %25 : vector<8x32xf32>
    %179 = arith.mulf %173, %178 : vector<8x32xf32>
    %180 = arith.addf %176, %179 : vector<8x32xf32>
    %181 = math.tanh %180 : vector<8x32xf32>
    %cst_51 = arith.constant 1.000000e+00 : f32
    %182 = vector.broadcast %cst_51 : f32 to vector<8x32xf32>
    %183 = arith.subf %182, %174 : vector<8x32xf32>
    %184 = arith.mulf %183, %181 : vector<8x32xf32>
    %185 = arith.mulf %174, %133 : vector<8x32xf32>
    %186 = arith.addf %184, %185 : vector<8x32xf32>
    %187 = arith.index_cast %137 : i32 to index
    %c0_52 = arith.constant 0 : index
    %188 = vector.load %arg15[%187, %c0_52] : memref<64x32xf32, #tpu.memory_space<vmem>>, vector<8x32xf32>
    tpu.vector_store %arg15[%187, %c0_52], %186 {strides = array<i32>} : memref<64x32xf32, #tpu.memory_space<vmem>>, vector<8x32xf32>,
    %c3_i32 = arith.constant 3 : i32
    %c8_i32_53 = arith.constant 8 : i32
    %189 = arith.muli %c3_i32, %c8_i32_53 : i32
    %190 = tpu.assume_multiple %189, 8 : i32
    %191 = arith.index_cast %190 : i32 to index
    %c0_54 = arith.constant 0 : index
    %192 = vector.load %arg14[%191, %c0_54] : memref<64x96xf32, #tpu.memory_space<vmem>>, vector<8x96xf32>
    %cst_55 = arith.constant dense<0.000000e+00> : vector<8x96xf32>
    %193 = tpu.matmul %161, %7, %cst_55 {dimension_numbers = #tpu.dot_dimension_numbers<[1], [0], [0], [1], [0, 0, 1, 1], [], []>} : vector<8x32xf32>, vector<32x96xf32>, vector<8x96xf32> -> vector<8x96xf32>
    %194 = vector.extract_strided_slice %192 {offsets = [0, 0], sizes = [8, 64], strides = [1, 1]} : vector<8x96xf32> to vector<8x64xf32>
    %195 = vector.extract_strided_slice %193 {offsets = [0, 0], sizes = [8, 64], strides = [1, 1]} : vector<8x96xf32> to vector<8x64xf32>
    %196 = arith.addf %194, %195 : vector<8x64xf32>
    %197 = arith.negf %196 : vector<8x64xf32>
    %198 = math.exp %197 : vector<8x64xf32>
    %cst_56 = arith.constant 1.000000e+00 : f32
    %199 = vector.broadcast %cst_56 : f32 to vector<8x64xf32>
    %200 = arith.addf %199, %198 : vector<8x64xf32>
    %201 = arith.divf %199, %200 : vector<8x64xf32>
    %202 = vector.extract_strided_slice %201 {offsets = [0, 0], sizes = [8, 32], strides = [1, 1]} : vector<8x64xf32> to vector<8x32xf32>
    %203 = vector.extract_strided_slice %201 {offsets = [0, 32], sizes = [8, 32], strides = [1, 1]} : vector<8x64xf32> to vector<8x32xf32>
    %204 = vector.extract_strided_slice %192 {offsets = [0, 64], sizes = [8, 32], strides = [1, 1]} : vector<8x96xf32> to vector<8x32xf32>
    %205 = vector.extract_strided_slice %193 {offsets = [0, 64], sizes = [8, 32], strides = [1, 1]} : vector<8x96xf32> to vector<8x32xf32>
    %206 = arith.addf %205, %12 : vector<8x32xf32>
    %207 = arith.mulf %202, %206 : vector<8x32xf32>
    %208 = arith.addf %204, %207 : vector<8x32xf32>
    %209 = math.tanh %208 : vector<8x32xf32>
    %cst_57 = arith.constant 1.000000e+00 : f32
    %210 = vector.broadcast %cst_57 : f32 to vector<8x32xf32>
    %211 = arith.subf %210, %203 : vector<8x32xf32>
    %212 = arith.mulf %211, %209 : vector<8x32xf32>
    %213 = arith.mulf %203, %161 : vector<8x32xf32>
    %214 = arith.addf %212, %213 : vector<8x32xf32>
    %cst_58 = arith.constant dense<0.000000e+00> : vector<8x96xf32>
    %215 = tpu.matmul %214, %8, %cst_58 {dimension_numbers = #tpu.dot_dimension_numbers<[1], [0], [0], [1], [0, 0, 1, 1], [], []>} : vector<8x32xf32>, vector<32x96xf32>, vector<8x96xf32> -> vector<8x96xf32>
    %cst_59 = arith.constant dense<0.000000e+00> : vector<8x96xf32>
    %216 = tpu.matmul %186, %9, %cst_59 {dimension_numbers = #tpu.dot_dimension_numbers<[1], [0], [0], [1], [0, 0, 1, 1], [], []>} : vector<8x32xf32>, vector<32x96xf32>, vector<8x96xf32> -> vector<8x96xf32>
    %217 = vector.extract_strided_slice %215 {offsets = [0, 0], sizes = [8, 64], strides = [1, 1]} : vector<8x96xf32> to vector<8x64xf32>
    %218 = vector.extract_strided_slice %216 {offsets = [0, 0], sizes = [8, 64], strides = [1, 1]} : vector<8x96xf32> to vector<8x64xf32>
    %219 = arith.addf %217, %218 : vector<8x64xf32>
    %220 = arith.addf %219, %19 : vector<8x64xf32>
    %221 = arith.negf %220 : vector<8x64xf32>
    %222 = math.exp %221 : vector<8x64xf32>
    %cst_60 = arith.constant 1.000000e+00 : f32
    %223 = vector.broadcast %cst_60 : f32 to vector<8x64xf32>
    %224 = arith.addf %223, %222 : vector<8x64xf32>
    %225 = arith.divf %223, %224 : vector<8x64xf32>
    %226 = vector.extract_strided_slice %225 {offsets = [0, 0], sizes = [8, 32], strides = [1, 1]} : vector<8x64xf32> to vector<8x32xf32>
    %227 = vector.extract_strided_slice %225 {offsets = [0, 32], sizes = [8, 32], strides = [1, 1]} : vector<8x64xf32> to vector<8x32xf32>
    %228 = vector.extract_strided_slice %215 {offsets = [0, 64], sizes = [8, 32], strides = [1, 1]} : vector<8x96xf32> to vector<8x32xf32>
    %229 = arith.addf %228, %22 : vector<8x32xf32>
    %230 = vector.extract_strided_slice %216 {offsets = [0, 64], sizes = [8, 32], strides = [1, 1]} : vector<8x96xf32> to vector<8x32xf32>
    %231 = arith.addf %230, %25 : vector<8x32xf32>
    %232 = arith.mulf %226, %231 : vector<8x32xf32>
    %233 = arith.addf %229, %232 : vector<8x32xf32>
    %234 = math.tanh %233 : vector<8x32xf32>
    %cst_61 = arith.constant 1.000000e+00 : f32
    %235 = vector.broadcast %cst_61 : f32 to vector<8x32xf32>
    %236 = arith.subf %235, %227 : vector<8x32xf32>
    %237 = arith.mulf %236, %234 : vector<8x32xf32>
    %238 = arith.mulf %227, %186 : vector<8x32xf32>
    %239 = arith.addf %237, %238 : vector<8x32xf32>
    %240 = arith.index_cast %190 : i32 to index
    %c0_62 = arith.constant 0 : index
    %241 = vector.load %arg15[%240, %c0_62] : memref<64x32xf32, #tpu.memory_space<vmem>>, vector<8x32xf32>
    tpu.vector_store %arg15[%240, %c0_62], %239 {strides = array<i32>} : memref<64x32xf32, #tpu.memory_space<vmem>>, vector<8x32xf32>,
    %c4_i32 = arith.constant 4 : i32
    %c8_i32_63 = arith.constant 8 : i32
    %242 = arith.muli %c4_i32, %c8_i32_63 : i32
    %243 = tpu.assume_multiple %242, 8 : i32
    %244 = arith.index_cast %243 : i32 to index
    %c0_64 = arith.constant 0 : index
    %245 = vector.load %arg14[%244, %c0_64] : memref<64x96xf32, #tpu.memory_space<vmem>>, vector<8x96xf32>
    %cst_65 = arith.constant dense<0.000000e+00> : vector<8x96xf32>
    %246 = tpu.matmul %214, %7, %cst_65 {dimension_numbers = #tpu.dot_dimension_numbers<[1], [0], [0], [1], [0, 0, 1, 1], [], []>} : vector<8x32xf32>, vector<32x96xf32>, vector<8x96xf32> -> vector<8x96xf32>
    %247 = vector.extract_strided_slice %245 {offsets = [0, 0], sizes = [8, 64], strides = [1, 1]} : vector<8x96xf32> to vector<8x64xf32>
    %248 = vector.extract_strided_slice %246 {offsets = [0, 0], sizes = [8, 64], strides = [1, 1]} : vector<8x96xf32> to vector<8x64xf32>
    %249 = arith.addf %247, %248 : vector<8x64xf32>
    %250 = arith.negf %249 : vector<8x64xf32>
    %251 = math.exp %250 : vector<8x64xf32>
    %cst_66 = arith.constant 1.000000e+00 : f32
    %252 = vector.broadcast %cst_66 : f32 to vector<8x64xf32>
    %253 = arith.addf %252, %251 : vector<8x64xf32>
    %254 = arith.divf %252, %253 : vector<8x64xf32>
    %255 = vector.extract_strided_slice %254 {offsets = [0, 0], sizes = [8, 32], strides = [1, 1]} : vector<8x64xf32> to vector<8x32xf32>
    %256 = vector.extract_strided_slice %254 {offsets = [0, 32], sizes = [8, 32], strides = [1, 1]} : vector<8x64xf32> to vector<8x32xf32>
    %257 = vector.extract_strided_slice %245 {offsets = [0, 64], sizes = [8, 32], strides = [1, 1]} : vector<8x96xf32> to vector<8x32xf32>
    %258 = vector.extract_strided_slice %246 {offsets = [0, 64], sizes = [8, 32], strides = [1, 1]} : vector<8x96xf32> to vector<8x32xf32>
    %259 = arith.addf %258, %12 : vector<8x32xf32>
    %260 = arith.mulf %255, %259 : vector<8x32xf32>
    %261 = arith.addf %257, %260 : vector<8x32xf32>
    %262 = math.tanh %261 : vector<8x32xf32>
    %cst_67 = arith.constant 1.000000e+00 : f32
    %263 = vector.broadcast %cst_67 : f32 to vector<8x32xf32>
    %264 = arith.subf %263, %256 : vector<8x32xf32>
    %265 = arith.mulf %264, %262 : vector<8x32xf32>
    %266 = arith.mulf %256, %214 : vector<8x32xf32>
    %267 = arith.addf %265, %266 : vector<8x32xf32>
    %cst_68 = arith.constant dense<0.000000e+00> : vector<8x96xf32>
    %268 = tpu.matmul %267, %8, %cst_68 {dimension_numbers = #tpu.dot_dimension_numbers<[1], [0], [0], [1], [0, 0, 1, 1], [], []>} : vector<8x32xf32>, vector<32x96xf32>, vector<8x96xf32> -> vector<8x96xf32>
    %cst_69 = arith.constant dense<0.000000e+00> : vector<8x96xf32>
    %269 = tpu.matmul %239, %9, %cst_69 {dimension_numbers = #tpu.dot_dimension_numbers<[1], [0], [0], [1], [0, 0, 1, 1], [], []>} : vector<8x32xf32>, vector<32x96xf32>, vector<8x96xf32> -> vector<8x96xf32>
    %270 = vector.extract_strided_slice %268 {offsets = [0, 0], sizes = [8, 64], strides = [1, 1]} : vector<8x96xf32> to vector<8x64xf32>
    %271 = vector.extract_strided_slice %269 {offsets = [0, 0], sizes = [8, 64], strides = [1, 1]} : vector<8x96xf32> to vector<8x64xf32>
    %272 = arith.addf %270, %271 : vector<8x64xf32>
    %273 = arith.addf %272, %19 : vector<8x64xf32>
    %274 = arith.negf %273 : vector<8x64xf32>
    %275 = math.exp %274 : vector<8x64xf32>
    %cst_70 = arith.constant 1.000000e+00 : f32
    %276 = vector.broadcast %cst_70 : f32 to vector<8x64xf32>
    %277 = arith.addf %276, %275 : vector<8x64xf32>
    %278 = arith.divf %276, %277 : vector<8x64xf32>
    %279 = vector.extract_strided_slice %278 {offsets = [0, 0], sizes = [8, 32], strides = [1, 1]} : vector<8x64xf32> to vector<8x32xf32>
    %280 = vector.extract_strided_slice %278 {offsets = [0, 32], sizes = [8, 32], strides = [1, 1]} : vector<8x64xf32> to vector<8x32xf32>
    %281 = vector.extract_strided_slice %268 {offsets = [0, 64], sizes = [8, 32], strides = [1, 1]} : vector<8x96xf32> to vector<8x32xf32>
    %282 = arith.addf %281, %22 : vector<8x32xf32>
    %283 = vector.extract_strided_slice %269 {offsets = [0, 64], sizes = [8, 32], strides = [1, 1]} : vector<8x96xf32> to vector<8x32xf32>
    %284 = arith.addf %283, %25 : vector<8x32xf32>
    %285 = arith.mulf %279, %284 : vector<8x32xf32>
    %286 = arith.addf %282, %285 : vector<8x32xf32>
    %287 = math.tanh %286 : vector<8x32xf32>
    %cst_71 = arith.constant 1.000000e+00 : f32
    %288 = vector.broadcast %cst_71 : f32 to vector<8x32xf32>
    %289 = arith.subf %288, %280 : vector<8x32xf32>
    %290 = arith.mulf %289, %287 : vector<8x32xf32>
    %291 = arith.mulf %280, %239 : vector<8x32xf32>
    %292 = arith.addf %290, %291 : vector<8x32xf32>
    %293 = arith.index_cast %243 : i32 to index
    %c0_72 = arith.constant 0 : index
    %294 = vector.load %arg15[%293, %c0_72] : memref<64x32xf32, #tpu.memory_space<vmem>>, vector<8x32xf32>
    tpu.vector_store %arg15[%293, %c0_72], %292 {strides = array<i32>} : memref<64x32xf32, #tpu.memory_space<vmem>>, vector<8x32xf32>,
    %c5_i32 = arith.constant 5 : i32
    %c8_i32_73 = arith.constant 8 : i32
    %295 = arith.muli %c5_i32, %c8_i32_73 : i32
    %296 = tpu.assume_multiple %295, 8 : i32
    %297 = arith.index_cast %296 : i32 to index
    %c0_74 = arith.constant 0 : index
    %298 = vector.load %arg14[%297, %c0_74] : memref<64x96xf32, #tpu.memory_space<vmem>>, vector<8x96xf32>
    %cst_75 = arith.constant dense<0.000000e+00> : vector<8x96xf32>
    %299 = tpu.matmul %267, %7, %cst_75 {dimension_numbers = #tpu.dot_dimension_numbers<[1], [0], [0], [1], [0, 0, 1, 1], [], []>} : vector<8x32xf32>, vector<32x96xf32>, vector<8x96xf32> -> vector<8x96xf32>
    %300 = vector.extract_strided_slice %298 {offsets = [0, 0], sizes = [8, 64], strides = [1, 1]} : vector<8x96xf32> to vector<8x64xf32>
    %301 = vector.extract_strided_slice %299 {offsets = [0, 0], sizes = [8, 64], strides = [1, 1]} : vector<8x96xf32> to vector<8x64xf32>
    %302 = arith.addf %300, %301 : vector<8x64xf32>
    %303 = arith.negf %302 : vector<8x64xf32>
    %304 = math.exp %303 : vector<8x64xf32>
    %cst_76 = arith.constant 1.000000e+00 : f32
    %305 = vector.broadcast %cst_76 : f32 to vector<8x64xf32>
    %306 = arith.addf %305, %304 : vector<8x64xf32>
    %307 = arith.divf %305, %306 : vector<8x64xf32>
    %308 = vector.extract_strided_slice %307 {offsets = [0, 0], sizes = [8, 32], strides = [1, 1]} : vector<8x64xf32> to vector<8x32xf32>
    %309 = vector.extract_strided_slice %307 {offsets = [0, 32], sizes = [8, 32], strides = [1, 1]} : vector<8x64xf32> to vector<8x32xf32>
    %310 = vector.extract_strided_slice %298 {offsets = [0, 64], sizes = [8, 32], strides = [1, 1]} : vector<8x96xf32> to vector<8x32xf32>
    %311 = vector.extract_strided_slice %299 {offsets = [0, 64], sizes = [8, 32], strides = [1, 1]} : vector<8x96xf32> to vector<8x32xf32>
    %312 = arith.addf %311, %12 : vector<8x32xf32>
    %313 = arith.mulf %308, %312 : vector<8x32xf32>
    %314 = arith.addf %310, %313 : vector<8x32xf32>
    %315 = math.tanh %314 : vector<8x32xf32>
    %cst_77 = arith.constant 1.000000e+00 : f32
    %316 = vector.broadcast %cst_77 : f32 to vector<8x32xf32>
    %317 = arith.subf %316, %309 : vector<8x32xf32>
    %318 = arith.mulf %317, %315 : vector<8x32xf32>
    %319 = arith.mulf %309, %267 : vector<8x32xf32>
    %320 = arith.addf %318, %319 : vector<8x32xf32>
    %cst_78 = arith.constant dense<0.000000e+00> : vector<8x96xf32>
    %321 = tpu.matmul %320, %8, %cst_78 {dimension_numbers = #tpu.dot_dimension_numbers<[1], [0], [0], [1], [0, 0, 1, 1], [], []>} : vector<8x32xf32>, vector<32x96xf32>, vector<8x96xf32> -> vector<8x96xf32>
    %cst_79 = arith.constant dense<0.000000e+00> : vector<8x96xf32>
    %322 = tpu.matmul %292, %9, %cst_79 {dimension_numbers = #tpu.dot_dimension_numbers<[1], [0], [0], [1], [0, 0, 1, 1], [], []>} : vector<8x32xf32>, vector<32x96xf32>, vector<8x96xf32> -> vector<8x96xf32>
    %323 = vector.extract_strided_slice %321 {offsets = [0, 0], sizes = [8, 64], strides = [1, 1]} : vector<8x96xf32> to vector<8x64xf32>
    %324 = vector.extract_strided_slice %322 {offsets = [0, 0], sizes = [8, 64], strides = [1, 1]} : vector<8x96xf32> to vector<8x64xf32>
    %325 = arith.addf %323, %324 : vector<8x64xf32>
    %326 = arith.addf %325, %19 : vector<8x64xf32>
    %327 = arith.negf %326 : vector<8x64xf32>
    %328 = math.exp %327 : vector<8x64xf32>
    %cst_80 = arith.constant 1.000000e+00 : f32
    %329 = vector.broadcast %cst_80 : f32 to vector<8x64xf32>
    %330 = arith.addf %329, %328 : vector<8x64xf32>
    %331 = arith.divf %329, %330 : vector<8x64xf32>
    %332 = vector.extract_strided_slice %331 {offsets = [0, 0], sizes = [8, 32], strides = [1, 1]} : vector<8x64xf32> to vector<8x32xf32>
    %333 = vector.extract_strided_slice %331 {offsets = [0, 32], sizes = [8, 32], strides = [1, 1]} : vector<8x64xf32> to vector<8x32xf32>
    %334 = vector.extract_strided_slice %321 {offsets = [0, 64], sizes = [8, 32], strides = [1, 1]} : vector<8x96xf32> to vector<8x32xf32>
    %335 = arith.addf %334, %22 : vector<8x32xf32>
    %336 = vector.extract_strided_slice %322 {offsets = [0, 64], sizes = [8, 32], strides = [1, 1]} : vector<8x96xf32> to vector<8x32xf32>
    %337 = arith.addf %336, %25 : vector<8x32xf32>
    %338 = arith.mulf %332, %337 : vector<8x32xf32>
    %339 = arith.addf %335, %338 : vector<8x32xf32>
    %340 = math.tanh %339 : vector<8x32xf32>
    %cst_81 = arith.constant 1.000000e+00 : f32
    %341 = vector.broadcast %cst_81 : f32 to vector<8x32xf32>
    %342 = arith.subf %341, %333 : vector<8x32xf32>
    %343 = arith.mulf %342, %340 : vector<8x32xf32>
    %344 = arith.mulf %333, %292 : vector<8x32xf32>
    %345 = arith.addf %343, %344 : vector<8x32xf32>
    %346 = arith.index_cast %296 : i32 to index
    %c0_82 = arith.constant 0 : index
    %347 = vector.load %arg15[%346, %c0_82] : memref<64x32xf32, #tpu.memory_space<vmem>>, vector<8x32xf32>
    tpu.vector_store %arg15[%346, %c0_82], %345 {strides = array<i32>} : memref<64x32xf32, #tpu.memory_space<vmem>>, vector<8x32xf32>,
    %c6_i32 = arith.constant 6 : i32
    %c8_i32_83 = arith.constant 8 : i32
    %348 = arith.muli %c6_i32, %c8_i32_83 : i32
    %349 = tpu.assume_multiple %348, 8 : i32
    %350 = arith.index_cast %349 : i32 to index
    %c0_84 = arith.constant 0 : index
    %351 = vector.load %arg14[%350, %c0_84] : memref<64x96xf32, #tpu.memory_space<vmem>>, vector<8x96xf32>
    %cst_85 = arith.constant dense<0.000000e+00> : vector<8x96xf32>
    %352 = tpu.matmul %320, %7, %cst_85 {dimension_numbers = #tpu.dot_dimension_numbers<[1], [0], [0], [1], [0, 0, 1, 1], [], []>} : vector<8x32xf32>, vector<32x96xf32>, vector<8x96xf32> -> vector<8x96xf32>
    %353 = vector.extract_strided_slice %351 {offsets = [0, 0], sizes = [8, 64], strides = [1, 1]} : vector<8x96xf32> to vector<8x64xf32>
    %354 = vector.extract_strided_slice %352 {offsets = [0, 0], sizes = [8, 64], strides = [1, 1]} : vector<8x96xf32> to vector<8x64xf32>
    %355 = arith.addf %353, %354 : vector<8x64xf32>
    %356 = arith.negf %355 : vector<8x64xf32>
    %357 = math.exp %356 : vector<8x64xf32>
    %cst_86 = arith.constant 1.000000e+00 : f32
    %358 = vector.broadcast %cst_86 : f32 to vector<8x64xf32>
    %359 = arith.addf %358, %357 : vector<8x64xf32>
    %360 = arith.divf %358, %359 : vector<8x64xf32>
    %361 = vector.extract_strided_slice %360 {offsets = [0, 0], sizes = [8, 32], strides = [1, 1]} : vector<8x64xf32> to vector<8x32xf32>
    %362 = vector.extract_strided_slice %360 {offsets = [0, 32], sizes = [8, 32], strides = [1, 1]} : vector<8x64xf32> to vector<8x32xf32>
    %363 = vector.extract_strided_slice %351 {offsets = [0, 64], sizes = [8, 32], strides = [1, 1]} : vector<8x96xf32> to vector<8x32xf32>
    %364 = vector.extract_strided_slice %352 {offsets = [0, 64], sizes = [8, 32], strides = [1, 1]} : vector<8x96xf32> to vector<8x32xf32>
    %365 = arith.addf %364, %12 : vector<8x32xf32>
    %366 = arith.mulf %361, %365 : vector<8x32xf32>
    %367 = arith.addf %363, %366 : vector<8x32xf32>
    %368 = math.tanh %367 : vector<8x32xf32>
    %cst_87 = arith.constant 1.000000e+00 : f32
    %369 = vector.broadcast %cst_87 : f32 to vector<8x32xf32>
    %370 = arith.subf %369, %362 : vector<8x32xf32>
    %371 = arith.mulf %370, %368 : vector<8x32xf32>
    %372 = arith.mulf %362, %320 : vector<8x32xf32>
    %373 = arith.addf %371, %372 : vector<8x32xf32>
    %cst_88 = arith.constant dense<0.000000e+00> : vector<8x96xf32>
    %374 = tpu.matmul %373, %8, %cst_88 {dimension_numbers = #tpu.dot_dimension_numbers<[1], [0], [0], [1], [0, 0, 1, 1], [], []>} : vector<8x32xf32>, vector<32x96xf32>, vector<8x96xf32> -> vector<8x96xf32>
    %cst_89 = arith.constant dense<0.000000e+00> : vector<8x96xf32>
    %375 = tpu.matmul %345, %9, %cst_89 {dimension_numbers = #tpu.dot_dimension_numbers<[1], [0], [0], [1], [0, 0, 1, 1], [], []>} : vector<8x32xf32>, vector<32x96xf32>, vector<8x96xf32> -> vector<8x96xf32>
    %376 = vector.extract_strided_slice %374 {offsets = [0, 0], sizes = [8, 64], strides = [1, 1]} : vector<8x96xf32> to vector<8x64xf32>
    %377 = vector.extract_strided_slice %375 {offsets = [0, 0], sizes = [8, 64], strides = [1, 1]} : vector<8x96xf32> to vector<8x64xf32>
    %378 = arith.addf %376, %377 : vector<8x64xf32>
    %379 = arith.addf %378, %19 : vector<8x64xf32>
    %380 = arith.negf %379 : vector<8x64xf32>
    %381 = math.exp %380 : vector<8x64xf32>
    %cst_90 = arith.constant 1.000000e+00 : f32
    %382 = vector.broadcast %cst_90 : f32 to vector<8x64xf32>
    %383 = arith.addf %382, %381 : vector<8x64xf32>
    %384 = arith.divf %382, %383 : vector<8x64xf32>
    %385 = vector.extract_strided_slice %384 {offsets = [0, 0], sizes = [8, 32], strides = [1, 1]} : vector<8x64xf32> to vector<8x32xf32>
    %386 = vector.extract_strided_slice %384 {offsets = [0, 32], sizes = [8, 32], strides = [1, 1]} : vector<8x64xf32> to vector<8x32xf32>
    %387 = vector.extract_strided_slice %374 {offsets = [0, 64], sizes = [8, 32], strides = [1, 1]} : vector<8x96xf32> to vector<8x32xf32>
    %388 = arith.addf %387, %22 : vector<8x32xf32>
    %389 = vector.extract_strided_slice %375 {offsets = [0, 64], sizes = [8, 32], strides = [1, 1]} : vector<8x96xf32> to vector<8x32xf32>
    %390 = arith.addf %389, %25 : vector<8x32xf32>
    %391 = arith.mulf %385, %390 : vector<8x32xf32>
    %392 = arith.addf %388, %391 : vector<8x32xf32>
    %393 = math.tanh %392 : vector<8x32xf32>
    %cst_91 = arith.constant 1.000000e+00 : f32
    %394 = vector.broadcast %cst_91 : f32 to vector<8x32xf32>
    %395 = arith.subf %394, %386 : vector<8x32xf32>
    %396 = arith.mulf %395, %393 : vector<8x32xf32>
    %397 = arith.mulf %386, %345 : vector<8x32xf32>
    %398 = arith.addf %396, %397 : vector<8x32xf32>
    %399 = arith.index_cast %349 : i32 to index
    %c0_92 = arith.constant 0 : index
    %400 = vector.load %arg15[%399, %c0_92] : memref<64x32xf32, #tpu.memory_space<vmem>>, vector<8x32xf32>
    tpu.vector_store %arg15[%399, %c0_92], %398 {strides = array<i32>} : memref<64x32xf32, #tpu.memory_space<vmem>>, vector<8x32xf32>,
    %c7_i32 = arith.constant 7 : i32
    %c8_i32_93 = arith.constant 8 : i32
    %401 = arith.muli %c7_i32, %c8_i32_93 : i32
    %402 = tpu.assume_multiple %401, 8 : i32
    %403 = arith.index_cast %402 : i32 to index
    %c0_94 = arith.constant 0 : index
    %404 = vector.load %arg14[%403, %c0_94] : memref<64x96xf32, #tpu.memory_space<vmem>>, vector<8x96xf32>
    %cst_95 = arith.constant dense<0.000000e+00> : vector<8x96xf32>
    %405 = tpu.matmul %373, %7, %cst_95 {dimension_numbers = #tpu.dot_dimension_numbers<[1], [0], [0], [1], [0, 0, 1, 1], [], []>} : vector<8x32xf32>, vector<32x96xf32>, vector<8x96xf32> -> vector<8x96xf32>
    %406 = vector.extract_strided_slice %404 {offsets = [0, 0], sizes = [8, 64], strides = [1, 1]} : vector<8x96xf32> to vector<8x64xf32>
    %407 = vector.extract_strided_slice %405 {offsets = [0, 0], sizes = [8, 64], strides = [1, 1]} : vector<8x96xf32> to vector<8x64xf32>
    %408 = arith.addf %406, %407 : vector<8x64xf32>
    %409 = arith.negf %408 : vector<8x64xf32>
    %410 = math.exp %409 : vector<8x64xf32>
    %cst_96 = arith.constant 1.000000e+00 : f32
    %411 = vector.broadcast %cst_96 : f32 to vector<8x64xf32>
    %412 = arith.addf %411, %410 : vector<8x64xf32>
    %413 = arith.divf %411, %412 : vector<8x64xf32>
    %414 = vector.extract_strided_slice %413 {offsets = [0, 0], sizes = [8, 32], strides = [1, 1]} : vector<8x64xf32> to vector<8x32xf32>
    %415 = vector.extract_strided_slice %413 {offsets = [0, 32], sizes = [8, 32], strides = [1, 1]} : vector<8x64xf32> to vector<8x32xf32>
    %416 = vector.extract_strided_slice %404 {offsets = [0, 64], sizes = [8, 32], strides = [1, 1]} : vector<8x96xf32> to vector<8x32xf32>
    %417 = vector.extract_strided_slice %405 {offsets = [0, 64], sizes = [8, 32], strides = [1, 1]} : vector<8x96xf32> to vector<8x32xf32>
    %418 = arith.addf %417, %12 : vector<8x32xf32>
    %419 = arith.mulf %414, %418 : vector<8x32xf32>
    %420 = arith.addf %416, %419 : vector<8x32xf32>
    %421 = math.tanh %420 : vector<8x32xf32>
    %cst_97 = arith.constant 1.000000e+00 : f32
    %422 = vector.broadcast %cst_97 : f32 to vector<8x32xf32>
    %423 = arith.subf %422, %415 : vector<8x32xf32>
    %424 = arith.mulf %423, %421 : vector<8x32xf32>
    %425 = arith.mulf %415, %373 : vector<8x32xf32>
    %426 = arith.addf %424, %425 : vector<8x32xf32>
    %cst_98 = arith.constant dense<0.000000e+00> : vector<8x96xf32>
    %427 = tpu.matmul %426, %8, %cst_98 {dimension_numbers = #tpu.dot_dimension_numbers<[1], [0], [0], [1], [0, 0, 1, 1], [], []>} : vector<8x32xf32>, vector<32x96xf32>, vector<8x96xf32> -> vector<8x96xf32>
    %cst_99 = arith.constant dense<0.000000e+00> : vector<8x96xf32>
    %428 = tpu.matmul %398, %9, %cst_99 {dimension_numbers = #tpu.dot_dimension_numbers<[1], [0], [0], [1], [0, 0, 1, 1], [], []>} : vector<8x32xf32>, vector<32x96xf32>, vector<8x96xf32> -> vector<8x96xf32>
    %429 = vector.extract_strided_slice %427 {offsets = [0, 0], sizes = [8, 64], strides = [1, 1]} : vector<8x96xf32> to vector<8x64xf32>
    %430 = vector.extract_strided_slice %428 {offsets = [0, 0], sizes = [8, 64], strides = [1, 1]} : vector<8x96xf32> to vector<8x64xf32>
    %431 = arith.addf %429, %430 : vector<8x64xf32>
    %432 = arith.addf %431, %19 : vector<8x64xf32>
    %433 = arith.negf %432 : vector<8x64xf32>
    %434 = math.exp %433 : vector<8x64xf32>
    %cst_100 = arith.constant 1.000000e+00 : f32
    %435 = vector.broadcast %cst_100 : f32 to vector<8x64xf32>
    %436 = arith.addf %435, %434 : vector<8x64xf32>
    %437 = arith.divf %435, %436 : vector<8x64xf32>
    %438 = vector.extract_strided_slice %437 {offsets = [0, 0], sizes = [8, 32], strides = [1, 1]} : vector<8x64xf32> to vector<8x32xf32>
    %439 = vector.extract_strided_slice %437 {offsets = [0, 32], sizes = [8, 32], strides = [1, 1]} : vector<8x64xf32> to vector<8x32xf32>
    %440 = vector.extract_strided_slice %427 {offsets = [0, 64], sizes = [8, 32], strides = [1, 1]} : vector<8x96xf32> to vector<8x32xf32>
    %441 = arith.addf %440, %22 : vector<8x32xf32>
    %442 = vector.extract_strided_slice %428 {offsets = [0, 64], sizes = [8, 32], strides = [1, 1]} : vector<8x96xf32> to vector<8x32xf32>
    %443 = arith.addf %442, %25 : vector<8x32xf32>
    %444 = arith.mulf %438, %443 : vector<8x32xf32>
    %445 = arith.addf %441, %444 : vector<8x32xf32>
    %446 = math.tanh %445 : vector<8x32xf32>
    %cst_101 = arith.constant 1.000000e+00 : f32
    %447 = vector.broadcast %cst_101 : f32 to vector<8x32xf32>
    %448 = arith.subf %447, %439 : vector<8x32xf32>
    %449 = arith.mulf %448, %446 : vector<8x32xf32>
    %450 = arith.mulf %439, %398 : vector<8x32xf32>
    %451 = arith.addf %449, %450 : vector<8x32xf32>
    %452 = arith.index_cast %402 : i32 to index
    %c0_102 = arith.constant 0 : index
    %453 = vector.load %arg15[%452, %c0_102] : memref<64x32xf32, #tpu.memory_space<vmem>>, vector<8x32xf32>
    tpu.vector_store %arg15[%452, %c0_102], %451 {strides = array<i32>} : memref<64x32xf32, #tpu.memory_space<vmem>>, vector<8x32xf32>,
    %c8_i32_103 = arith.constant 8 : i32
    %c0_104 = arith.constant 0 : index
    %c0_105 = arith.constant 0 : index
    %c0_106 = arith.constant 0 : index
    %454 = vector.load %arg13[%c0_104, %c0_105, %c0_106] : memref<2x8x32xf32, #tpu.memory_space<vmem>>, vector<1x8x32xf32>
    %455 = vector.shape_cast %454 : vector<1x8x32xf32> to vector<8x32xf32>
    %456 = vector.shape_cast %426 : vector<8x32xf32> to vector<1x8x32xf32>
    tpu.vector_store %arg13[%c0_104, %c0_105, %c0_106], %456 {strides = array<i32>} : memref<2x8x32xf32, #tpu.memory_space<vmem>>, vector<1x8x32xf32>,
    %c1_107 = arith.constant 1 : index
    %c0_108 = arith.constant 0 : index
    %c0_109 = arith.constant 0 : index
    %457 = vector.load %arg13[%c1_107, %c0_108, %c0_109] : memref<2x8x32xf32, #tpu.memory_space<vmem>>, vector<1x8x32xf32>
    %458 = vector.shape_cast %457 : vector<1x8x32xf32> to vector<8x32xf32>
    %459 = vector.shape_cast %451 : vector<8x32xf32> to vector<1x8x32xf32>
    tpu.vector_store %arg13[%c1_107, %c0_108, %c0_109], %459 {strides = array<i32>} : memref<2x8x32xf32, #tpu.memory_space<vmem>>, vector<1x8x32xf32>,
    %c0_110 = arith.constant 0 : index
    %c0_111 = arith.constant 0 : index
    %460 = vector.load %arg15[%c0_110, %c0_111] : memref<64x32xf32, #tpu.memory_space<vmem>>, vector<64x32xf32>
    %c0_112 = arith.constant 0 : index
    %c0_113 = arith.constant 0 : index
    %461 = vector.load %arg10[%c0_112, %c0_113] : memref<32x128xf32, #tpu.memory_space<vmem>>, vector<32x128xf32>
    %cst_114 = arith.constant dense<0.000000e+00> : vector<64x128xf32>
    %462 = tpu.matmul %460, %461, %cst_114 {dimension_numbers = #tpu.dot_dimension_numbers<[1], [0], [0], [1], [0, 0, 1, 1], [], []>} : vector<64x32xf32>, vector<32x128xf32>, vector<64x128xf32> -> vector<64x128xf32>
    %c0_115 = arith.constant 0 : index
    %c0_116 = arith.constant 0 : index
    %463 = vector.load %arg11[%c0_115, %c0_116] : memref<1x128xf32, #tpu.memory_space<vmem>>, vector<1x128xf32>
    %464 = vector.broadcast %463 : vector<1x128xf32> to vector<64x128xf32>
    %465 = arith.addf %462, %464 : vector<64x128xf32>
    %c0_117 = arith.constant 0 : index
    %c0_118 = arith.constant 0 : index
    %466 = vector.load %arg12[%c0_117, %c0_118] : memref<64x128xf32, #tpu.memory_space<vmem>>, vector<64x128xf32>
    tpu.vector_store %arg12[%c0_117, %c0_118], %465 {strides = array<i32>} : memref<64x128xf32, #tpu.memory_space<vmem>>, vector<64x128xf32>,
    return
  }
}

</mosaic_0001>

<bundles_post_ra>
// kernel: rnn_model_forward.1
= control target key start
LH: loop header
LB: loop body
LE: loop exit
PB: predicated region body
PF: predicated region fallthrough
CT: control target
= control target key end

     0   :  { %vm60_vm0 = vcmask 130048   ;;  %v3289_v9 = vmov 0.0   ;;  %vm3291_vm1 = vmmov 0   ;;  %vm242_vm2 = vcmask 261120   ;;  %s3293_s20 = smov 96   ;;  %s4040_s2 = inlined_call_operand.vmem [shape: f32[16,96], index: 2, kind: input, shape index: {}]   ;;  %s4041_s0 = inlined_call_operand.vmem [shape: f32[64,16], index: 0, kind: input, shape index: {}]   ;;  %s4042_s3 = inlined_call_operand.vmem [shape: f32[32,96], index: 3, kind: input, shape index: {}]   ;;  %s4043_s5 = inlined_call_operand.vmem [shape: f32[1,32], index: 5, kind: input, shape index: {}]   ;;  %s4044_s1 = inlined_call_operand.vmem [shape: f32[2,8,32], index: 1, kind: input, shape index: {}]   ;;  %s4045_s4 = inlined_call_operand.vmem [shape: f32[1,96], index: 4, kind: input, shape index: {}]   ;;  %s4046_s7 = inlined_call_operand.vmem [shape: f32[32,96], index: 7, kind: input, shape index: {}]   ;;  %s4047_s6 = inlined_call_operand.vmem [shape: f32[32,96], index: 6, kind: input, shape index: {}]   ;;  %s4048_s9 = inlined_call_operand.vmem [shape: f32[1,96], index: 9, kind: input, shape index: {}]   ;;  %s4049_s8 = inlined_call_operand.vmem [shape: f32[1,96], index: 8, kind: input, shape index: {}]   ;;  %s4050_s10 = inlined_call_operand.vmem [shape: f32[32,128], index: 10, kind: input, shape index: {}]   ;;  %s4051_s13 = inlined_call_operand.vmem [shape: f32[2,8,32], index: 13, kind: output, shape index: {1}]   ;;  %s4052_s11 = inlined_call_operand.vmem [shape: f32[1,128], index: 11, kind: input, shape index: {}]   ;;  %s4053_s12 = inlined_call_operand.vmem [shape: f32[64,128], index: 12, kind: output, shape index: {0}]  }
   0x1   :  { %v52_v0 = vld [vmem:[%s4040_s2 + $0x8] sm:$0xff]  ;;  %v51_v1 = vld [vmem:[%s4040_s2] sm:$0xff]  ;;  %v49_v6 = vld [vmem:[%s4041_s0 + $0x30] sm:$0xff]  ;;  %vm190_vm3 = vcmask 785408   ;;  %v221_v57 = vlaneseq }
   0x2   :  { %2872 = vmatprep.subr.mxu0 %v52_v0  ;;  %3172 = vmatprep.subr.mxu1 %v52_v0  ;;  %v43_v2 = vld [vmem:[%s4041_s0] sm:$0xff]  ;;  %v44_v4 = vld [vmem:[%s4041_s0 + $0x8] sm:$0xff]  ;;  %v3390_v7 = vld [vmem:[%s4042_s3 + $0x18] sm:$0xff] }
   0x3   :  { %2873 = vmatpush3.msra.mxu0 %v52_v0  ;;  %3174 = vmatpush3.msra.mxu1 %v52_v0  ;;  %v47_v3 = vld [vmem:[%s4041_s0 + $0x20] sm:$0xff]  ;;  %v48_v5 = vld [vmem:[%s4041_s0 + $0x28] sm:$0xff]  ;;  %v3402_v10 = vld [vmem:[%s4042_s3 + $0x10] sm:$0xff]  ;;  %v222_v62 = vshrl.u32 %v221_v57, 7 }
   0x4   :  { %2874 = vmatprep.subr.mxu0 %v51_v1  ;;  %3173 = vmatprep.subr.mxu1 %v51_v1  ;;  %v2678_v8 = vld [vmem:[%s4043_s5] ss:$0 sm:$0xff]  ;;  %v50_v11 = vld [vmem:[%s4041_s0 + $0x38] sm:$0xff]  ;;  %s3290_s5 = smov 64   ;;  %v3413_v12 = vld [vmem:[%s4042_s3 + $0x8] sm:$0xff] }
   0x5   :  { %2875 = vmatpush3.msra.mxu0 %v51_v1  ;;  %3175 = vmatpush3.msra.mxu1 %v51_v1  ;;  %v3422_v13 = vld [vmem:[%s4042_s3] sm:$0xff]  ;;  %v45_v42 = vld [vmem:[%s4041_s0 + $0x10] sm:$0xff]  ;;  %v46_v43 = vld [vmem:[%s4041_s0 + $0x18] sm:$0xff]  ;;  %v223_v1 = vsub.s32 0, %v222_v62 }
   0x6   :  { %2876 = vmatprep.mubr.msk.f32.mxu0 %vm60_vm0, %v43_v2  ;;  %2882 = vmatprep.mubr.msk.f32.mxu1 %vm60_vm0, %v47_v3  ;;  %v238_v14 = vld [vmem:[%s4044_s1] sm:$0xff]  ;;  %v3468_v44 = vld [vmem:[%s4046_s7 + $0x18] sm:$0xff]  ;;  %v3474_v45 = vld [vmem:[%s4046_s7 + $0x10] sm:$0xff] }
   0x7   :  { %2877 = vmatmul.mubr.msk.f32.vlgmr.msra.gmra.mxu0 %vm60_vm0, %v44_v4  ;;  %2883 = vmatmul.mubr.msk.f32.vlgmr.msra.gmra.mxu1 %vm60_vm0, %v48_v5  ;;  %v3439_v15 = vld [vmem:[%s4045_s4] ss:$0 sm:$0xff]  ;;  %s3292_s4 = smov 32   ;;  %v3480_v46 = vld [vmem:[%s4047_s6 + $0x18] sm:$0xff]  ;;  %v3487_v47 = vld [vmem:[%s4046_s7 + $0x8] sm:$0xff] }
   0x8   :  { %2888 = vmatprep.subr.mxu1 %v3289_v9  ;;  %2885 = vmatprep.mubr.msk.f32.mxu1 %vm60_vm0, %v49_v6  ;;  %v3495_v48 = vld [vmem:[%s4047_s6 + $0x10] sm:$0xff]  ;;  %v3501_v49 = vld [vmem:[%s4046_s7] sm:$0xff]  ;;  %v3508_v50 = vld [vmem:[%s4044_s1 + $0x8] sm:$0xff] }
   0x9   :  { %2889 = vmatpush3.msra.mxu1 %v3390_v7  ;;  %323 = vrot.lane.b32.xlu0 %v2678_v8, %s3290_s5  ;;  %v3516_v51 = vld [vmem:[%s4047_s6 + $0x8] sm:$0xff]  ;;  %v3526_v53 = vld [vmem:[%s4047_s6] sm:$0xff] }
   0xa   :  { %2890 = vmatprep.subr.mxu1 %v3289_v9  ;;  %2910 = vmatprep.subr.mxu0 %v3289_v9  ;;  %v218_v60 = vld [vmem:[%s4048_s9] sm:$0x1] }
   0xb   :  { %2891 = vmatpush3.msra.mxu1 %v3402_v10  ;;  %2879 = vmatprep.mubr.msk.f32.mxu0 %vm60_vm0, %v45_v42  ;;  %v217_v61 = vld [vmem:[%s4049_s8] sm:$0x1] }
   0xc   :  { %2886 = vmatmul.mubr.msk.f32.gmra.mxu1 %vm60_vm0, %v50_v11  ;;  %2892 = vmatprep.subr.mxu1 %v3289_v9  ;;  %v219_v63 = vadd.f32 %v218_v60, %v217_v61  ;;  %v3555_v3 = vrot.slane %v217_v61, %v223_v1  ;;  %v3560_v11 = vrot.slane %v218_v60, %v223_v1 }
   0xd   :  { %2893 = vmatpush3.msra.mxu1 %v3413_v12  ;;  %2896 = vmatprep.mubr.msk.f32.mxu1 %vm3291_vm1, %v3289_v9 }
   0xe   :  { %2894 = vmatprep.subr.mxu1 %v3289_v9  ;;  %2911 = vmatpush3.msra.mxu0 %v3468_v44  ;;  %v3553_v2 = vrot.slane %v219_v63, %v223_v1 }
   0xf   :  { %2895 = vmatpush3.msra.mxu1 %v3422_v13  ;;  %2912 = vmatprep.subr.mxu0 %v3289_v9 }
  0x10   :  { %2897 = vmatmul.mubr.msk.f32.vlgmr.msra.gmra.mxu1 %vm242_vm2, %v238_v14  ;;  %2899 = vmatprep.subr.mxu1 %v3289_v9 }
  0x11   :  { %2907 = vmatprep.mubr.msk.f32.mxu1 %vm3291_vm1, %v3289_v9  ;;  %2880 = vmatmul.mubr.msk.f32.gmra.mxu0 %vm60_vm0, %v46_v43 }
  0x12   :  { %2913 = vmatpush3.msra.mxu0 %v3474_v45  ;;  %2918 = vmatprep.mubr.msk.f32.mxu0 %vm3291_vm1, %v3289_v9 }
  0x13   :  { %2914 = vmatprep.subr.mxu0 %v3289_v9  ;;  %2900 = vmatpush3.msra.mxu1 %v3480_v46 }
  0x14   :  { %2915 = vmatpush3.msra.mxu0 %v3487_v47  ;;  %2901 = vmatprep.subr.mxu1 %v3289_v9 }
  0x15   :  { %2916 = vmatprep.subr.mxu0 %v3289_v9  ;;  %2902 = vmatpush3.msra.mxu1 %v3495_v48 }
  0x16   :  { %2917 = vmatpush3.msra.mxu0 %v3501_v49  ;;  %2903 = vmatprep.subr.mxu1 %v3289_v9 }
  0x17   :  { %2919 = vmatmul.mubr.msk.f32.vlgmr.msra.gmra.mxu0 %vm242_vm2, %v3508_v50  ;;  %2904 = vmatpush3.msra.mxu1 %v3516_v51 }
  0x18   :  { %2932 = vmatprep.subr.mxu0 %v3289_v9  ;;  %2905 = vmatprep.subr.mxu1 %v3289_v9 }
  0x19   :  { %2933 = vmatpush3.msra.mxu0 %v3480_v46  ;;  %2906 = vmatpush3.msra.mxu1 %v3526_v53 }
  0x1a   :  { %2934 = vmatprep.subr.mxu0 %v3289_v9  ;;  %2921 = vmatprep.subr.mxu1 %v3289_v9 }
  0x1b   :  { %2935 = vmatpush3.msra.mxu0 %v3495_v48  ;;  %2940 = vmatprep.mubr.msk.f32.mxu0 %vm3291_vm1, %v3289_v9 }
  0x1c   :  { %2936 = vmatprep.subr.mxu0 %v3289_v9 }
  0x1d   :  { %2937 = vmatpush3.msra.mxu0 %v3516_v51 }
  0x1e   :  { %2938 = vmatprep.subr.mxu0 %v3289_v9 }
  0x1f   :  { %2939 = vmatpush3.msra.mxu0 %v3526_v53 }
  0x20   :  { %2954 = vmatprep.subr.mxu0 %v3289_v9 }
  0x7b   :  { %v3450_v27 = vpop.permute.xlu0 %323 }
  0xc7   :  { %v2878_v16 = vpop.f32.mrf.mxu0  ;;  %v2884_v17 = vpop.f32.mrf.mxu1 }
  0xc8   :  { %v157_v18 = vadd.f32 %v2878_v16, %v3439_v15  ;;  %v177_v19 = vadd.f32 %v2884_v17, %v3439_v15 }
  0xc9   :  { %v151_v20 = vpop.f32.mrf.mxu0  ;;  %v171_v21 = vpop.f32.mrf.mxu1 }
  0xca   :  { %192 = vst.msk [vmem:[#allocation2 + $0x8] sm:$0xff] %vm190_vm3, %v157_v18  ;;  %196 = vst.msk [vmem:[#allocation2 + $0x28] sm:$0xff] %vm190_vm3, %v177_v19  ;;  %v152_v22 = vadd.f32 %v3439_v15, %v151_v20  ;;  %v172_v23 = vadd.f32 %v3439_v15, %v171_v21 }
  0xcc   :  { %191 = vst.msk [vmem:[#allocation2] sm:$0xff] %vm190_vm3, %v152_v22  ;;  %195 = vst.msk [vmem:[#allocation2 + $0x20] sm:$0xff] %vm190_vm3, %v172_v23  ;;  %v2887_v24 = vpop.f32.mrf.mxu1 }
  0xcd   :  { %v187_v25 = vadd.f32 %v2887_v24, %v3439_v15 }
  0xce   :  { %v181_v26 = vpop.f32.mrf.mxu1 }
  0xcf   :  { %198 = vst.msk [vmem:[#allocation2 + $0x38] sm:$0xff] %vm190_vm3, %v187_v25  ;;  %v182_v28 = vadd.f32 %v3439_v15, %v181_v26 }
  0xd0   :  { %v312_v29 = vpop.f32.mrf.mxu1 }
  0xd1   :  { %197 = vst.msk [vmem:[#allocation2 + $0x30] sm:$0xff] %vm190_vm3, %v182_v28  ;;  %v326_v30 = vadd.f32 %v3450_v27, %v312_v29  ;;  %v2881_v4 = vpop.f32.mrf.mxu0 }
  0xd2   :  { %v2898_v31 = vpop.f32.mrf.mxu1  ;;  %v167_v5 = vadd.f32 %v2881_v4, %v3439_v15 }
  0xd3   :  { %328 = vrot.lane.b32.xlu0 %v326_v30, %s3290_s5  ;;  %v241_v32 = vld [vmem:[#allocation2] sm:$0xff]  ;;  %v161_v6 = vpop.f32.mrf.mxu0 }
  0xd4   :  { %v316_v33 = vadd.f32 %v312_v29, %v241_v32  ;;  %194 = vst.msk [vmem:[#allocation2 + $0x18] sm:$0xff] %vm190_vm3, %v167_v5  ;;  %v162_v8 = vadd.f32 %v3439_v15, %v161_v6 }
  0xd6   :  { %v2681_v34 = vmul.f32 -1.442695, %v316_v33  ;;  %193 = vst.msk [vmem:[#allocation2 + $0x10] sm:$0xff] %vm190_vm3, %v162_v8 }
  0xd7   :  { %344 = vrot.lane.b32.xlu0 %v238_v14, %s3292_s4  ;;  %v493_v14 = vpop.f32.mrf.mxu0 }
  0xd8   :  { %3181 = vpow2.f32 %v2681_v34  ;;  %v506_v16 = vadd.f32 %v493_v14, %v3560_v11 }
  0xd9   :  { %v2920_v17 = vpop.f32.mrf.mxu0 }
  0xe5   :  { %v3182_v35 = vpop.eup %3181 }
  0xe6   :  { %v320_v36 = vadd.f32 1.0, %v3182_v35 }
  0xe8   :  { %3183 = vrcp.f32 %v320_v36 }
  0xf5   :  { %v3184_v37 = vpop.eup %3183 }
  0xf6   :  { %v338_v55 = vsub.f32 1.0, %v3184_v37 }
 0x145   :  { %v329_v38 = vpop.permute.xlu0 %328 }
 0x146   :  { %v331_v39 = vmul.f32 %v3184_v37, %v329_v38 }
 0x148   :  { %333 = vrot.lane.b32.xlu1 %v331_v39, %s3290_s5 }
 0x149   :  { %v345_v54 = vpop.permute.xlu0 %344 }
 0x14a   :  { %v347_v58 = vmul.f32 %v3184_v37, %v345_v54 }
 0x1ba   :  { %v334_v40 = vpop.permute.xlu1 %333 }
 0x1bb   :  { %v336_v41 = vadd.f32 %v334_v40, %v241_v32  ;;  %v535_v32 = vld [vmem:[#allocation2 + $0x8] sm:$0xff] }
 0x1bd   :  { %3185 = vtanh.f32 %v336_v41 }
 0x1ca   :  { %v3186_v52 = vpop.eup %3185 }
 0x1cb   :  { %340 = vrot.lane.b32.xlu1 %v3186_v52, %s3293_s20 }
 0x23d   :  { %v341_v56 = vpop.permute.xlu1 %340 }
 0x23e   :  { %v343_v59 = vmul.f32 %v341_v56, %v338_v55 }
 0x240   :  { %v3549_v0 = vadd.f32 %v347_v58, %v343_v59 }
 0x242   :  { %350 = vrot.lane.b32.xlu1 %v3549_v0, %s3293_s20 }
 0x246   :  { %508 = vrot.lane.b32.xlu1 %v506_v16, %s3290_s5 }
 0x2b4   :  { %v351_v18 = vpop.permute.xlu1 %350 }
 0x2b5   :  { %2908 = vmatmul.mubr.msk.f32.vlgmr.msra.gmra.mxu1 %vm242_vm2, %v351_v18 }
 0x2b6   :  { %2922 = vmatpush3.msra.mxu1 %v3390_v7  ;;  %2929 = vmatprep.mubr.msk.f32.mxu1 %vm3291_vm1, %v3289_v9 }
 0x2b7   :  { %2923 = vmatprep.subr.mxu1 %v3289_v9 }
 0x2b8   :  { %2924 = vmatpush3.msra.mxu1 %v3402_v10  ;;  %v509_v29 = vpop.permute.xlu1 %508 }
 0x2b9   :  { %2925 = vmatprep.subr.mxu1 %v3289_v9 }
 0x2ba   :  { %2926 = vmatpush3.msra.mxu1 %v3413_v12 }
 0x2bb   :  { %2927 = vmatprep.subr.mxu1 %v3289_v9 }
 0x2bc   :  { %2928 = vmatpush3.msra.mxu1 %v3422_v13 }
 0x2bd   :  { %2930 = vmatmul.mubr.msk.f32.vlgmr.msra.gmra.mxu1 %vm242_vm2, %v351_v18  ;;  %2943 = vmatprep.subr.mxu1 %v3289_v9 }
 0x2be   :  { %2944 = vmatpush3.msra.mxu1 %v3468_v44  ;;  %2951 = vmatprep.mubr.msk.f32.mxu1 %vm3291_vm1, %v3289_v9 }
 0x2bf   :  { %2945 = vmatprep.subr.mxu1 %v3289_v9 }
 0x2c0   :  { %2946 = vmatpush3.msra.mxu1 %v3474_v45 }
 0x2c1   :  { %2947 = vmatprep.subr.mxu1 %v3289_v9 }
 0x2c2   :  { %2948 = vmatpush3.msra.mxu1 %v3487_v47 }
 0x2c3   :  { %2949 = vmatprep.subr.mxu1 %v3289_v9 }
 0x2c4   :  { %2950 = vmatpush3.msra.mxu1 %v3501_v49 }
 0x2c5   :  { %2965 = vmatprep.subr.mxu1 %v3289_v9 }
 0x375   :  { %v420_v15 = vpop.f32.mrf.mxu1 }
 0x376   :  { %v497_v19 = vadd.f32 %v493_v14, %v420_v15  ;;  %v505_v40 = vadd.f32 %v420_v15, %v3555_v3 }
 0x377   :  { %v2909_v20 = vpop.f32.mrf.mxu1 }
 0x378   :  { %v498_v21 = vadd.f32 %v497_v19, %v3553_v2 }
 0x37a   :  { %v2684_v22 = vmul.f32 -1.442695, %v498_v21 }
 0x37c   :  { %3187 = vpow2.f32 %v2684_v22  ;;  %v816_v22 = vld [vmem:[#allocation2 + $0x10] sm:$0xff] }
 0x37d   :  { %v602_v23 = vpop.f32.mrf.mxu1 }
 0x37e   :  { %v613_v24 = vadd.f32 %v602_v23, %v3450_v27  ;;  %v606_v33 = vadd.f32 %v602_v23, %v535_v32 }
 0x37f   :  { %v2931_v25 = vpop.f32.mrf.mxu1 }
 0x380   :  { %615 = vrot.lane.b32.xlu0 %v613_v24, %s3290_s5  ;;  %v2686_v34 = vmul.f32 -1.442695, %v606_v33 }
 0x389   :  { %v3188_v26 = vpop.eup %3187 }
 0x38a   :  { %v502_v28 = vadd.f32 1.0, %v3188_v26 }
 0x38c   :  { %3189 = vrcp.f32 %v502_v28 }
 0x38d   :  { %3191 = vpow2.f32 %v2686_v34 }
 0x399   :  { %v3190_v30 = vpop.eup %3189 }
 0x39a   :  { %v511_v31 = vmul.f32 %v3190_v30, %v509_v29  ;;  %v3192_v35 = vpop.eup %3191  ;;  %v518_v61 = vsub.f32 1.0, %v3190_v30 }
 0x39b   :  { %v610_v36 = vadd.f32 1.0, %v3192_v35 }
 0x39c   :  { %513 = vrot.lane.b32.xlu1 %v511_v31, %s3290_s5 }
 0x39d   :  { %3193 = vrcp.f32 %v610_v36 }
 0x3aa   :  { %v3194_v37 = vpop.eup %3193 }
 0x3ab   :  { %v625_v56 = vsub.f32 1.0, %v3194_v37  ;;  %v631_v58 = vmul.f32 %v3194_v37, %v3549_v0 }
 0x3f2   :  { %v616_v38 = vpop.permute.xlu0 %615 }
 0x3f3   :  { %v618_v39 = vmul.f32 %v3194_v37, %v616_v38 }
 0x3f5   :  { %620 = vrot.lane.b32.xlu0 %v618_v39, %s3290_s5 }
 0x40e   :  { %v514_v41 = vpop.permute.xlu1 %513 }
 0x40f   :  { %v516_v42 = vadd.f32 %v514_v41, %v505_v40 }
 0x411   :  { %3195 = vtanh.f32 %v516_v42 }
 0x41e   :  { %v3196_v43 = vpop.eup %3195 }
 0x41f   :  { %520 = vrot.lane.b32.xlu1 %v3196_v43, %s3293_s20 }
 0x467   :  { %v621_v52 = vpop.permute.xlu0 %620 }
 0x468   :  { %v623_v54 = vadd.f32 %v621_v52, %v535_v32 }
 0x46a   :  { %3197 = vtanh.f32 %v623_v54 }
 0x477   :  { %v3198_v55 = vpop.eup %3197 }
 0x478   :  { %627 = vrot.lane.b32.xlu0 %v3198_v55, %s3293_s20 }
 0x47c   :  { %524 = vrot.lane.b32.xlu0 %v3508_v50, %s3292_s4 }
 0x491   :  { %v521_v60 = vpop.permute.xlu1 %520 }
 0x492   :  { %v523_v1 = vmul.f32 %v521_v60, %v518_v61 }
 0x4ea   :  { %v628_v57 = vpop.permute.xlu0 %627 }
 0x4eb   :  { %v630_v59 = vmul.f32 %v628_v57, %v625_v56 }
 0x4ed   :  { %v3598_v62 = vadd.f32 %v631_v58, %v630_v59 }
 0x4ee   :  { %v525_v63 = vpop.permute.xlu0 %524 }
 0x4ef   :  { %v527_v4 = vmul.f32 %v3190_v30, %v525_v63  ;;  %634 = vrot.lane.b32.xlu1 %v3598_v62, %s3293_s20 }
 0x4f1   :  { %v3602_v5 = vadd.f32 %v527_v4, %v523_v1 }
 0x4f3   :  { %530 = vrot.lane.b32.xlu0 %v3602_v5, %s3293_s20 }
 0x561   :  { %v635_v50 = vpop.permute.xlu1 %634 }
 0x562   :  { %2941 = vmatmul.mubr.msk.f32.vlgmr.msra.gmra.mxu0 %vm242_vm2, %v635_v50 }
 0x563   :  { %2955 = vmatpush3.msra.mxu0 %v3390_v7  ;;  %2962 = vmatprep.mubr.msk.f32.mxu0 %vm3291_vm1, %v3289_v9 }
 0x564   :  { %2956 = vmatprep.subr.mxu0 %v3289_v9 }
 0x565   :  { %2957 = vmatpush3.msra.mxu0 %v3402_v10  ;;  %v531_v0 = vpop.permute.xlu0 %530 }
 0x566   :  { %533 = vst.msk [vmem:[#allocation3] sm:$0xff] %vm242_vm2, %v531_v0  ;;  %2958 = vmatprep.subr.mxu0 %v3289_v9  ;;  %2952 = vmatmul.mubr.msk.f32.vlgmr.msra.gmra.mxu1 %vm242_vm2, %v531_v0 }
 0x567   :  { %2959 = vmatpush3.msra.mxu0 %v3413_v12  ;;  %2966 = vmatpush3.msra.mxu1 %v3480_v46 }
 0x568   :  { %2960 = vmatprep.subr.mxu0 %v3289_v9  ;;  %2967 = vmatprep.subr.mxu1 %v3289_v9 }
 0x569   :  { %2961 = vmatpush3.msra.mxu0 %v3422_v13  ;;  %2968 = vmatpush3.msra.mxu1 %v3495_v48 }
 0x56a   :  { %2963 = vmatmul.mubr.msk.f32.vlgmr.msra.gmra.mxu0 %vm242_vm2, %v635_v50  ;;  %2976 = vmatprep.subr.mxu0 %v3289_v9 }
 0x56b   :  { %2977 = vmatpush3.msra.mxu0 %v3468_v44  ;;  %2969 = vmatprep.subr.mxu1 %v3289_v9 }
 0x56c   :  { %2978 = vmatprep.subr.mxu0 %v3289_v9  ;;  %2970 = vmatpush3.msra.mxu1 %v3516_v51 }
 0x56d   :  { %2979 = vmatpush3.msra.mxu0 %v3474_v45  ;;  %2984 = vmatprep.mubr.msk.f32.mxu0 %vm3291_vm1, %v3289_v9 }
 0x56e   :  { %2980 = vmatprep.subr.mxu0 %v3289_v9  ;;  %2971 = vmatprep.subr.mxu1 %v3289_v9 }
 0x56f   :  { %2981 = vmatpush3.msra.mxu0 %v3487_v47  ;;  %2972 = vmatpush3.msra.mxu1 %v3526_v53 }
 0x570   :  { %2982 = vmatprep.subr.mxu0 %v3289_v9  ;;  %2973 = vmatprep.mubr.msk.f32.mxu1 %vm3291_vm1, %v3289_v9 }
 0x571   :  { %2983 = vmatpush3.msra.mxu0 %v3501_v49  ;;  %2987 = vmatprep.subr.mxu1 %v3289_v9 }
 0x572   :  { %2998 = vmatprep.subr.mxu0 %v3289_v9 }
 0x622   :  { %v704_v6 = vpop.f32.mrf.mxu0 }
 0x623   :  { %v788_v37 = vadd.f32 %v704_v6, %v3555_v3 }
 0x624   :  { %v2942_v8 = vpop.f32.mrf.mxu0 }
 0x626   :  { %v776_v14 = vpop.f32.mrf.mxu1 }
 0x627   :  { %v780_v16 = vadd.f32 %v776_v14, %v704_v6  ;;  %v789_v17 = vadd.f32 %v776_v14, %v3560_v11 }
 0x628   :  { %v2953_v18 = vpop.f32.mrf.mxu1 }
 0x629   :  { %791 = vrot.lane.b32.xlu0 %v789_v17, %s3290_s5  ;;  %v781_v21 = vadd.f32 %v780_v16, %v3553_v2 }
 0x62a   :  { %v883_v15 = vpop.f32.mrf.mxu0 }
 0x62b   :  { %v894_v19 = vadd.f32 %v883_v15, %v3450_v27  ;;  %v2689_v23 = vmul.f32 -1.442695, %v781_v21  ;;  %v887_v24 = vadd.f32 %v883_v15, %v816_v22 }
 0x62c   :  { %v2964_v20 = vpop.f32.mrf.mxu0 }
 0x62d   :  { %896 = vrot.lane.b32.xlu1 %v894_v19, %s3290_s5  ;;  %3199 = vpow2.f32 %v2689_v23  ;;  %v2691_v25 = vmul.f32 -1.442695, %v887_v24  ;;  %v1097_v19 = vld [vmem:[#allocation2 + $0x18] sm:$0xff] }
 0x62f   :  { %3201 = vpow2.f32 %v2691_v25 }
 0x63a   :  { %v3200_v26 = vpop.eup %3199 }
 0x63b   :  { %v785_v28 = vadd.f32 1.0, %v3200_v26 }
 0x63c   :  { %v3202_v29 = vpop.eup %3201 }
 0x63d   :  { %3203 = vrcp.f32 %v785_v28  ;;  %v891_v30 = vadd.f32 1.0, %v3202_v29 }
 0x63f   :  { %3205 = vrcp.f32 %v891_v30 }
 0x64a   :  { %v3204_v31 = vpop.eup %3203 }
 0x64b   :  { %v801_v52 = vsub.f32 1.0, %v3204_v31  ;;  %v807_v55 = vmul.f32 %v3204_v31, %v3602_v5 }
 0x64c   :  { %v3206_v34 = vpop.eup %3205 }
 0x64d   :  { %v906_v58 = vsub.f32 1.0, %v3206_v34  ;;  %v912_v60 = vmul.f32 %v3206_v34, %v3598_v62 }
 0x69b   :  { %v792_v32 = vpop.permute.xlu0 %791 }
 0x69c   :  { %v794_v33 = vmul.f32 %v3204_v31, %v792_v32 }
 0x69e   :  { %796 = vrot.lane.b32.xlu0 %v794_v33, %s3290_s5 }
 0x69f   :  { %v897_v35 = vpop.permute.xlu1 %896 }
 0x6a0   :  { %v899_v36 = vmul.f32 %v3206_v34, %v897_v35 }
 0x6a2   :  { %901 = vrot.lane.b32.xlu1 %v899_v36, %s3290_s5 }
 0x710   :  { %v797_v38 = vpop.permute.xlu0 %796 }
 0x711   :  { %v799_v39 = vadd.f32 %v797_v38, %v788_v37 }
 0x713   :  { %3207 = vtanh.f32 %v799_v39 }
 0x714   :  { %v902_v40 = vpop.permute.xlu1 %901 }
 0x715   :  { %v904_v41 = vadd.f32 %v902_v40, %v816_v22 }
 0x717   :  { %3209 = vtanh.f32 %v904_v41 }
 0x720   :  { %v3208_v42 = vpop.eup %3207 }
 0x721   :  { %803 = vrot.lane.b32.xlu0 %v3208_v42, %s3293_s20 }
 0x724   :  { %v3210_v43 = vpop.eup %3209 }
 0x725   :  { %908 = vrot.lane.b32.xlu1 %v3210_v43, %s3293_s20 }
 0x793   :  { %v804_v54 = vpop.permute.xlu0 %803 }
 0x794   :  { %v806_v56 = vmul.f32 %v804_v54, %v801_v52 }
 0x796   :  { %v3651_v57 = vadd.f32 %v807_v55, %v806_v56 }
 0x797   :  { %v909_v59 = vpop.permute.xlu1 %908 }
 0x798   :  { %v911_v61 = vmul.f32 %v909_v59, %v906_v58  ;;  %810 = vrot.lane.b32.xlu0 %v3651_v57, %s3293_s20 }
 0x79a   :  { %v3656_v63 = vadd.f32 %v912_v60, %v911_v61 }
 0x79c   :  { %915 = vrot.lane.b32.xlu1 %v3656_v63, %s3293_s20 }
 0x80a   :  { %v811_v1 = vpop.permute.xlu0 %810 }
 0x80b   :  { %814 = vst.msk [vmem:[#allocation3 + $0x8] sm:$0xff] %vm242_vm2, %v811_v1  ;;  %2985 = vmatmul.mubr.msk.f32.vlgmr.msra.gmra.mxu0 %vm242_vm2, %v811_v1 }
 0x80c   :  { %2999 = vmatpush3.msra.mxu0 %v3480_v46  ;;  %3006 = vmatprep.mubr.msk.f32.mxu0 %vm3291_vm1, %v3289_v9 }
 0x80d   :  { %3000 = vmatprep.subr.mxu0 %v3289_v9 }
 0x80e   :  { %v916_v62 = vpop.permute.xlu1 %915  ;;  %3001 = vmatpush3.msra.mxu0 %v3495_v48 }
 0x80f   :  { %2974 = vmatmul.mubr.msk.f32.vlgmr.msra.gmra.mxu1 %vm242_vm2, %v916_v62  ;;  %3002 = vmatprep.subr.mxu0 %v3289_v9 }
 0x810   :  { %2988 = vmatpush3.msra.mxu1 %v3390_v7  ;;  %2995 = vmatprep.mubr.msk.f32.mxu1 %vm3291_vm1, %v3289_v9 }
 0x811   :  { %2989 = vmatprep.subr.mxu1 %v3289_v9  ;;  %3003 = vmatpush3.msra.mxu0 %v3516_v51 }
 0x812   :  { %2990 = vmatpush3.msra.mxu1 %v3402_v10  ;;  %3004 = vmatprep.subr.mxu0 %v3289_v9 }
 0x813   :  { %2991 = vmatprep.subr.mxu1 %v3289_v9  ;;  %3005 = vmatpush3.msra.mxu0 %v3526_v53 }
 0x814   :  { %2992 = vmatpush3.msra.mxu1 %v3413_v12  ;;  %3020 = vmatprep.subr.mxu0 %v3289_v9 }
 0x815   :  { %2993 = vmatprep.subr.mxu1 %v3289_v9 }
 0x816   :  { %2994 = vmatpush3.msra.mxu1 %v3422_v13 }
 0x817   :  { %2996 = vmatmul.mubr.msk.f32.vlgmr.msra.gmra.mxu1 %vm242_vm2, %v916_v62  ;;  %3009 = vmatprep.subr.mxu1 %v3289_v9 }
 0x818   :  { %3010 = vmatpush3.msra.mxu1 %v3468_v44  ;;  %3017 = vmatprep.mubr.msk.f32.mxu1 %vm3291_vm1, %v3289_v9 }
 0x819   :  { %3011 = vmatprep.subr.mxu1 %v3289_v9 }
 0x81a   :  { %3012 = vmatpush3.msra.mxu1 %v3474_v45 }
 0x81b   :  { %3013 = vmatprep.subr.mxu1 %v3289_v9 }
 0x81c   :  { %3014 = vmatpush3.msra.mxu1 %v3487_v47 }
 0x81d   :  { %3015 = vmatprep.subr.mxu1 %v3289_v9 }
 0x81e   :  { %3016 = vmatpush3.msra.mxu1 %v3501_v49 }
 0x81f   :  { %3031 = vmatprep.subr.mxu1 %v3289_v9 }
 0x8cb   :  { %v1057_v4 = vpop.f32.mrf.mxu0 }
 0x8cc   :  { %v1070_v5 = vadd.f32 %v1057_v4, %v3560_v11 }
 0x8cd   :  { %v2986_v50 = vpop.f32.mrf.mxu0 }
 0x8ce   :  { %1072 = vrot.lane.b32.xlu0 %v1070_v5, %s3290_s5 }
 0x8cf   :  { %v985_v0 = vpop.f32.mrf.mxu1 }
 0x8d0   :  { %v1061_v6 = vadd.f32 %v1057_v4, %v985_v0  ;;  %v1069_v33 = vadd.f32 %v985_v0, %v3555_v3 }
 0x8d1   :  { %v2975_v8 = vpop.f32.mrf.mxu1 }
 0x8d2   :  { %v1062_v18 = vadd.f32 %v1061_v6, %v3553_v2 }
 0x8d4   :  { %v2694_v15 = vmul.f32 -1.442695, %v1062_v18 }
 0x8d6   :  { %3211 = vpow2.f32 %v2694_v15 }
 0x8d7   :  { %v1164_v14 = vpop.f32.mrf.mxu1 }
 0x8d8   :  { %v1175_v16 = vadd.f32 %v1164_v14, %v3450_v27  ;;  %v1168_v20 = vadd.f32 %v1164_v14, %v1097_v19 }
 0x8d9   :  { %v2997_v17 = vpop.f32.mrf.mxu1 }
 0x8da   :  { %1177 = vrot.lane.b32.xlu1 %v1175_v16, %s3290_s5  ;;  %v2696_v21 = vmul.f32 -1.442695, %v1168_v20  ;;  %v1378_v16 = vld [vmem:[#allocation2 + $0x20] sm:$0xff] }
 0x8dc   :  { %3213 = vpow2.f32 %v2696_v21 }
 0x8e3   :  { %v3212_v22 = vpop.eup %3211 }
 0x8e4   :  { %v1066_v23 = vadd.f32 1.0, %v3212_v22 }
 0x8e6   :  { %3215 = vrcp.f32 %v1066_v23 }
 0x8e9   :  { %v3214_v24 = vpop.eup %3213 }
 0x8ea   :  { %v1172_v25 = vadd.f32 1.0, %v3214_v24 }
 0x8ec   :  { %3217 = vrcp.f32 %v1172_v25 }
 0x8f3   :  { %v3216_v26 = vpop.eup %3215 }
 0x8f4   :  { %v1082_v40 = vsub.f32 1.0, %v3216_v26  ;;  %v1088_v42 = vmul.f32 %v3216_v26, %v3651_v57 }
 0x8f9   :  { %v3218_v30 = vpop.eup %3217 }
 0x8fa   :  { %v1187_v54 = vsub.f32 1.0, %v3218_v30  ;;  %v1193_v56 = vmul.f32 %v3218_v30, %v3656_v63 }
 0x940   :  { %v1073_v28 = vpop.permute.xlu0 %1072 }
 0x941   :  { %v1075_v29 = vmul.f32 %v3216_v26, %v1073_v28 }
 0x943   :  { %1077 = vrot.lane.b32.xlu0 %v1075_v29, %s3290_s5 }
 0x94c   :  { %v1178_v31 = vpop.permute.xlu1 %1177 }
 0x94d   :  { %v1180_v32 = vmul.f32 %v3218_v30, %v1178_v31 }
 0x94f   :  { %1182 = vrot.lane.b32.xlu1 %v1180_v32, %s3290_s5 }
 0x9b5   :  { %v1078_v34 = vpop.permute.xlu0 %1077 }
 0x9b6   :  { %v1080_v35 = vadd.f32 %v1078_v34, %v1069_v33 }
 0x9b8   :  { %3219 = vtanh.f32 %v1080_v35 }
 0x9c1   :  { %v1183_v36 = vpop.permute.xlu1 %1182 }
 0x9c2   :  { %v1185_v37 = vadd.f32 %v1183_v36, %v1097_v19 }
 0x9c4   :  { %3221 = vtanh.f32 %v1185_v37 }
 0x9c5   :  { %v3220_v38 = vpop.eup %3219 }
 0x9c6   :  { %1084 = vrot.lane.b32.xlu0 %v3220_v38, %s3293_s20 }
 0x9d1   :  { %v3222_v39 = vpop.eup %3221 }
 0x9d2   :  { %1189 = vrot.lane.b32.xlu1 %v3222_v39, %s3293_s20 }
 0xa38   :  { %v1085_v41 = vpop.permute.xlu0 %1084 }
 0xa39   :  { %v1087_v43 = vmul.f32 %v1085_v41, %v1082_v40 }
 0xa3b   :  { %v3705_v52 = vadd.f32 %v1088_v42, %v1087_v43 }
 0xa3d   :  { %1091 = vrot.lane.b32.xlu0 %v3705_v52, %s3293_s20 }
 0xa44   :  { %v1190_v55 = vpop.permute.xlu1 %1189 }
 0xa45   :  { %v1192_v58 = vmul.f32 %v1190_v55, %v1187_v54 }
 0xa47   :  { %v3710_v59 = vadd.f32 %v1193_v56, %v1192_v58 }
 0xa49   :  { %1196 = vrot.lane.b32.xlu1 %v3710_v59, %s3293_s20 }
 0xaaf   :  { %v1092_v60 = vpop.permute.xlu0 %1091 }
 0xab0   :  { %1095 = vst.msk [vmem:[#allocation3 + $0x10] sm:$0xff] %vm242_vm2, %v1092_v60  ;;  %3018 = vmatmul.mubr.msk.f32.vlgmr.msra.gmra.mxu1 %vm242_vm2, %v1092_v60 }
 0xab1   :  { %3032 = vmatpush3.msra.mxu1 %v3480_v46  ;;  %3039 = vmatprep.mubr.msk.f32.mxu1 %vm3291_vm1, %v3289_v9 }
 0xab2   :  { %3033 = vmatprep.subr.mxu1 %v3289_v9 }
 0xab3   :  { %3034 = vmatpush3.msra.mxu1 %v3495_v48 }
 0xab4   :  { %3035 = vmatprep.subr.mxu1 %v3289_v9 }
 0xab5   :  { %3036 = vmatpush3.msra.mxu1 %v3516_v51 }
 0xab6   :  { %3037 = vmatprep.subr.mxu1 %v3289_v9 }
 0xab7   :  { %3038 = vmatpush3.msra.mxu1 %v3526_v53 }
 0xab8   :  { %3053 = vmatprep.subr.mxu1 %v3289_v9 }
 0xabb   :  { %v1197_v57 = vpop.permute.xlu1 %1196 }
 0xabc   :  { %3007 = vmatmul.mubr.msk.f32.vlgmr.msra.gmra.mxu0 %vm242_vm2, %v1197_v57 }
 0xabd   :  { %3021 = vmatpush3.msra.mxu0 %v3390_v7  ;;  %3028 = vmatprep.mubr.msk.f32.mxu0 %vm3291_vm1, %v3289_v9 }
 0xabe   :  { %3022 = vmatprep.subr.mxu0 %v3289_v9 }
 0xabf   :  { %3023 = vmatpush3.msra.mxu0 %v3402_v10 }
 0xac0   :  { %3024 = vmatprep.subr.mxu0 %v3289_v9 }
 0xac1   :  { %3025 = vmatpush3.msra.mxu0 %v3413_v12 }
 0xac2   :  { %3026 = vmatprep.subr.mxu0 %v3289_v9 }
 0xac3   :  { %3027 = vmatpush3.msra.mxu0 %v3422_v13 }
 0xac4   :  { %3029 = vmatmul.mubr.msk.f32.vlgmr.msra.gmra.mxu0 %vm242_vm2, %v1197_v57  ;;  %3042 = vmatprep.subr.mxu0 %v3289_v9 }
 0xac5   :  { %3043 = vmatpush3.msra.mxu0 %v3468_v44  ;;  %3050 = vmatprep.mubr.msk.f32.mxu0 %vm3291_vm1, %v3289_v9 }
 0xac6   :  { %3044 = vmatprep.subr.mxu0 %v3289_v9 }
 0xac7   :  { %3045 = vmatpush3.msra.mxu0 %v3474_v45 }
 0xac8   :  { %3046 = vmatprep.subr.mxu0 %v3289_v9 }
 0xac9   :  { %3047 = vmatpush3.msra.mxu0 %v3487_v47 }
 0xaca   :  { %3048 = vmatprep.subr.mxu0 %v3289_v9 }
 0xacb   :  { %3049 = vmatpush3.msra.mxu0 %v3501_v49 }
 0xacc   :  { %3064 = vmatprep.subr.mxu0 %v3289_v9 }
 0xb70   :  { %v1338_v61 = vpop.f32.mrf.mxu1 }
 0xb71   :  { %v1351_v63 = vadd.f32 %v1338_v61, %v3560_v11 }
 0xb72   :  { %v3019_v1 = vpop.f32.mrf.mxu1 }
 0xb73   :  { %1353 = vrot.lane.b32.xlu1 %v1351_v63, %s3290_s5  ;;  %v1659_v63 = vld [vmem:[#allocation2 + $0x28] sm:$0xff] }
 0xb7c   :  { %v1266_v62 = vpop.f32.mrf.mxu0 }
 0xb7d   :  { %v1342_v4 = vadd.f32 %v1338_v61, %v1266_v62  ;;  %v1350_v29 = vadd.f32 %v1266_v62, %v3555_v3 }
 0xb7e   :  { %v3008_v5 = vpop.f32.mrf.mxu0 }
 0xb7f   :  { %v1343_v8 = vadd.f32 %v1342_v4, %v3553_v2 }
 0xb81   :  { %v2699_v14 = vmul.f32 -1.442695, %v1343_v8 }
 0xb83   :  { %3223 = vpow2.f32 %v2699_v14 }
 0xb84   :  { %v1445_v50 = vpop.f32.mrf.mxu0 }
 0xb85   :  { %v1456_v0 = vadd.f32 %v1445_v50, %v3450_v27  ;;  %v1449_v17 = vadd.f32 %v1445_v50, %v1378_v16 }
 0xb86   :  { %v3030_v6 = vpop.f32.mrf.mxu0 }
 0xb87   :  { %1458 = vrot.lane.b32.xlu0 %v1456_v0, %s3290_s5  ;;  %v2701_v15 = vmul.f32 -1.442695, %v1449_v17 }
 0xb89   :  { %3225 = vpow2.f32 %v2701_v15 }
 0xb90   :  { %v3224_v18 = vpop.eup %3223 }
 0xb91   :  { %v1347_v19 = vadd.f32 1.0, %v3224_v18 }
 0xb93   :  { %3227 = vrcp.f32 %v1347_v19 }
 0xb96   :  { %v3226_v20 = vpop.eup %3225 }
 0xb97   :  { %v1453_v24 = vadd.f32 1.0, %v3226_v20 }
 0xb99   :  { %3229 = vrcp.f32 %v1453_v24 }
 0xba0   :  { %v3228_v21 = vpop.eup %3227 }
 0xba1   :  { %v1363_v36 = vsub.f32 1.0, %v3228_v21  ;;  %v1369_v38 = vmul.f32 %v3228_v21, %v3705_v52 }
 0xba6   :  { %v3230_v25 = vpop.eup %3229 }
 0xba7   :  { %v1468_v41 = vsub.f32 1.0, %v3230_v25  ;;  %v1474_v43 = vmul.f32 %v3230_v25, %v3710_v59 }
 0xbe5   :  { %v1354_v22 = vpop.permute.xlu1 %1353 }
 0xbe6   :  { %v1356_v23 = vmul.f32 %v3228_v21, %v1354_v22 }
 0xbe8   :  { %1358 = vrot.lane.b32.xlu1 %v1356_v23, %s3290_s5 }
 0xbf9   :  { %v1459_v26 = vpop.permute.xlu0 %1458 }
 0xbfa   :  { %v1461_v28 = vmul.f32 %v3230_v25, %v1459_v26 }
 0xbfc   :  { %1463 = vrot.lane.b32.xlu0 %v1461_v28, %s3290_s5 }
 0xc5a   :  { %v1359_v30 = vpop.permute.xlu1 %1358 }
 0xc5b   :  { %v1361_v31 = vadd.f32 %v1359_v30, %v1350_v29 }
 0xc5d   :  { %3231 = vtanh.f32 %v1361_v31 }
 0xc6a   :  { %v3232_v32 = vpop.eup %3231 }
 0xc6b   :  { %1365 = vrot.lane.b32.xlu1 %v3232_v32, %s3293_s20 }
 0xc6e   :  { %v1464_v33 = vpop.permute.xlu0 %1463 }
 0xc6f   :  { %v1466_v34 = vadd.f32 %v1464_v33, %v1378_v16 }
 0xc71   :  { %3233 = vtanh.f32 %v1466_v34 }
 0xc7e   :  { %v3234_v35 = vpop.eup %3233 }
 0xc7f   :  { %1470 = vrot.lane.b32.xlu0 %v3234_v35, %s3293_s20 }
 0xcdd   :  { %v1366_v37 = vpop.permute.xlu1 %1365 }
 0xcde   :  { %v1368_v39 = vmul.f32 %v1366_v37, %v1363_v36  ;;  %v3869_v36 = vld [vmem:[%s4046_s7 + $0x18] sm:$0xff]  ;;  %v3878_v37 = vld [vmem:[%s4046_s7 + $0x10] sm:$0xff] }
 0xce0   :  { %v3759_v40 = vadd.f32 %v1369_v38, %v1368_v39  ;;  %v3885_v38 = vld [vmem:[%s4046_s7 + $0x8] sm:$0xff]  ;;  %v3892_v39 = vld [vmem:[%s4046_s7] sm:$0xff] }
 0xce2   :  { %1372 = vrot.lane.b32.xlu1 %v3759_v40, %s3293_s20 }
 0xcf1   :  { %v1471_v42 = vpop.permute.xlu0 %1470 }
 0xcf2   :  { %v1473_v54 = vmul.f32 %v1471_v42, %v1468_v41 }
 0xcf4   :  { %v3764_v55 = vadd.f32 %v1474_v43, %v1473_v54 }
 0xcf6   :  { %1477 = vrot.lane.b32.xlu0 %v3764_v55, %s3293_s20 }
 0xd54   :  { %v1373_v56 = vpop.permute.xlu1 %1372 }
 0xd55   :  { %1376 = vst.msk [vmem:[#allocation3 + $0x18] sm:$0xff] %vm242_vm2, %v1373_v56  ;;  %3051 = vmatmul.mubr.msk.f32.vlgmr.msra.gmra.mxu0 %vm242_vm2, %v1373_v56 }
 0xd56   :  { %3065 = vmatpush3.msra.mxu0 %v3480_v46  ;;  %3072 = vmatprep.mubr.msk.f32.mxu0 %vm3291_vm1, %v3289_v9 }
 0xd57   :  { %3066 = vmatprep.subr.mxu0 %v3289_v9 }
 0xd58   :  { %3067 = vmatpush3.msra.mxu0 %v3495_v48 }
 0xd59   :  { %3068 = vmatprep.subr.mxu0 %v3289_v9 }
 0xd5a   :  { %3069 = vmatpush3.msra.mxu0 %v3516_v51 }
 0xd5b   :  { %3070 = vmatprep.subr.mxu0 %v3289_v9 }
 0xd5c   :  { %3071 = vmatpush3.msra.mxu0 %v3526_v53 }
 0xd5d   :  { %3086 = vmatprep.subr.mxu0 %v3289_v9 }
 0xd68   :  { %v1478_v52 = vpop.permute.xlu0 %1477 }
 0xd69   :  { %3040 = vmatmul.mubr.msk.f32.vlgmr.msra.gmra.mxu1 %vm242_vm2, %v1478_v52 }
 0xd6a   :  { %3054 = vmatpush3.msra.mxu1 %v3390_v7  ;;  %3061 = vmatprep.mubr.msk.f32.mxu1 %vm3291_vm1, %v3289_v9 }
 0xd6b   :  { %3055 = vmatprep.subr.mxu1 %v3289_v9 }
 0xd6c   :  { %3056 = vmatpush3.msra.mxu1 %v3402_v10 }
 0xd6d   :  { %3057 = vmatprep.subr.mxu1 %v3289_v9 }
 0xd6e   :  { %3058 = vmatpush3.msra.mxu1 %v3413_v12 }
 0xd6f   :  { %3059 = vmatprep.subr.mxu1 %v3289_v9 }
 0xd70   :  { %3060 = vmatpush3.msra.mxu1 %v3422_v13 }
 0xd71   :  { %3062 = vmatmul.mubr.msk.f32.vlgmr.msra.gmra.mxu1 %vm242_vm2, %v1478_v52  ;;  %3075 = vmatprep.subr.mxu1 %v3289_v9 }
 0xd72   :  { %3076 = vmatpush3.msra.mxu1 %v3468_v44  ;;  %3083 = vmatprep.mubr.msk.f32.mxu1 %vm3291_vm1, %v3289_v9 }
 0xd73   :  { %3077 = vmatprep.subr.mxu1 %v3289_v9 }
 0xd74   :  { %3078 = vmatpush3.msra.mxu1 %v3474_v45 }
 0xd75   :  { %3079 = vmatprep.subr.mxu1 %v3289_v9 }
 0xd76   :  { %3080 = vmatpush3.msra.mxu1 %v3487_v47 }
 0xd77   :  { %3081 = vmatprep.subr.mxu1 %v3289_v9 }
 0xd78   :  { %3082 = vmatpush3.msra.mxu1 %v3501_v49 }
 0xd79   :  { %3097 = vmatprep.subr.mxu1 %v3289_v9 }
 0xe15   :  { %v1619_v7 = vpop.f32.mrf.mxu0 }
 0xe16   :  { %v1632_v10 = vadd.f32 %v1619_v7, %v3560_v11 }
 0xe17   :  { %v3052_v12 = vpop.f32.mrf.mxu0 }
 0xe18   :  { %1634 = vrot.lane.b32.xlu1 %v1632_v10, %s3290_s5 }
 0xe29   :  { %v1547_v13 = vpop.f32.mrf.mxu1 }
 0xe2a   :  { %v1623_v47 = vadd.f32 %v1619_v7, %v1547_v13  ;;  %v1631_v17 = vadd.f32 %v1547_v13, %v3555_v3 }
 0xe2b   :  { %v3041_v44 = vpop.f32.mrf.mxu1 }
 0xe2c   :  { %v1624_v60 = vadd.f32 %v1623_v47, %v3553_v2 }
 0xe2e   :  { %v2704_v49 = vmul.f32 -1.442695, %v1624_v60 }
 0xe30   :  { %3235 = vpow2.f32 %v2704_v49 }
 0xe31   :  { %v1726_v58 = vpop.f32.mrf.mxu1 }
 0xe32   :  { %v1737_v45 = vadd.f32 %v1726_v58, %v3450_v27  ;;  %v1730_v1 = vadd.f32 %v1726_v58, %v1659_v63  ;;  %v1940_v58 = vld [vmem:[#allocation2 + $0x30] sm:$0xff] }
 0xe33   :  { %v3063_v59 = vpop.f32.mrf.mxu1 }
 0xe34   :  { %1739 = vrot.lane.b32.xlu0 %v1737_v45, %s3290_s5  ;;  %v2706_v62 = vmul.f32 -1.442695, %v1730_v1 }
 0xe3d   :  { %v3236_v57 = vpop.eup %3235 }
 0xe3e   :  { %v1628_v61 = vadd.f32 1.0, %v3236_v57 }
 0xe40   :  { %3237 = vrcp.f32 %v1628_v61 }
 0xe41   :  { %3239 = vpow2.f32 %v2706_v62 }
 0xe4d   :  { %v3238_v4 = vpop.eup %3237 }
 0xe4e   :  { %v3240_v0 = vpop.eup %3239  ;;  %v1644_v23 = vsub.f32 1.0, %v3238_v4  ;;  %v1650_v25 = vmul.f32 %v3238_v4, %v3759_v40 }
 0xe4f   :  { %v1734_v6 = vadd.f32 1.0, %v3240_v0 }
 0xe51   :  { %3241 = vrcp.f32 %v1734_v6 }
 0xe5e   :  { %v3242_v8 = vpop.eup %3241 }
 0xe5f   :  { %v1749_v29 = vsub.f32 1.0, %v3242_v8  ;;  %v1755_v31 = vmul.f32 %v3242_v8, %v3764_v55 }
 0xe8a   :  { %v1635_v5 = vpop.permute.xlu1 %1634 }
 0xe8b   :  { %v1637_v50 = vmul.f32 %v3238_v4, %v1635_v5 }
 0xe8d   :  { %1639 = vrot.lane.b32.xlu1 %v1637_v50, %s3290_s5 }
 0xea6   :  { %v1740_v14 = vpop.permute.xlu0 %1739 }
 0xea7   :  { %v1742_v16 = vmul.f32 %v3242_v8, %v1740_v14 }
 0xea9   :  { %1744 = vrot.lane.b32.xlu0 %v1742_v16, %s3290_s5 }
 0xeff   :  { %v1640_v18 = vpop.permute.xlu1 %1639 }
 0xf00   :  { %v1642_v15 = vadd.f32 %v1640_v18, %v1631_v17 }
 0xf02   :  { %3243 = vtanh.f32 %v1642_v15 }
 0xf0f   :  { %v3244_v19 = vpop.eup %3243 }
 0xf10   :  { %1646 = vrot.lane.b32.xlu1 %v3244_v19, %s3293_s20 }
 0xf1b   :  { %v1745_v20 = vpop.permute.xlu0 %1744 }
 0xf1c   :  { %v1747_v21 = vadd.f32 %v1745_v20, %v1659_v63 }
 0xf1e   :  { %3245 = vtanh.f32 %v1747_v21 }
 0xf2b   :  { %v3246_v22 = vpop.eup %3245 }
 0xf2c   :  { %1751 = vrot.lane.b32.xlu0 %v3246_v22, %s3293_s20 }
 0xf82   :  { %v1647_v24 = vpop.permute.xlu1 %1646 }
 0xf83   :  { %v1649_v26 = vmul.f32 %v1647_v24, %v1644_v23 }
 0xf85   :  { %v3813_v28 = vadd.f32 %v1650_v25, %v1649_v26  ;;  %v3285_v26 = vld [vmem:[%s4047_s6 + $0x18] sm:$0xff] }
 0xf87   :  { %1653 = vrot.lane.b32.xlu1 %v3813_v28, %s3293_s20 }
 0xf9e   :  { %v1752_v30 = vpop.permute.xlu0 %1751 }
 0xf9f   :  { %v1754_v32 = vmul.f32 %v1752_v30, %v1749_v29  ;;  %v3287_v29 = vld [vmem:[%s4047_s6 + $0x8] sm:$0xff]  ;;  %v3288_v30 = vld [vmem:[%s4047_s6] sm:$0xff] }
 0xfa1   :  { %v3818_v33 = vadd.f32 %v1755_v31, %v1754_v32 }
 0xfa3   :  { %1758 = vrot.lane.b32.xlu0 %v3818_v33, %s3293_s20 }
 0xff9   :  { %v1654_v34 = vpop.permute.xlu1 %1653 }
 0xffa   :  { %1657 = vst.msk [vmem:[#allocation3 + $0x20] sm:$0xff] %vm242_vm2, %v1654_v34  ;;  %3084 = vmatmul.mubr.msk.f32.vlgmr.msra.gmra.mxu1 %vm242_vm2, %v1654_v34 }
 0xffb   :  { %3098 = vmatpush3.msra.mxu1 %v3480_v46  ;;  %3105 = vmatprep.mubr.msk.f32.mxu1 %vm3291_vm1, %v3289_v9  ;;  %v3838_v46 = vld [vmem:[%s4042_s3 + $0x18] sm:$0xff] }
 0xffc   :  { %3099 = vmatprep.subr.mxu1 %v3289_v9 }
 0xffd   :  { %3100 = vmatpush3.msra.mxu1 %v3495_v48  ;;  %v3847_v48 = vld [vmem:[%s4042_s3 + $0x10] sm:$0xff] }
 0xffe   :  { %3101 = vmatprep.subr.mxu1 %v3289_v9 }
 0xfff   :  { %3102 = vmatpush3.msra.mxu1 %v3516_v51  ;;  %v3854_v51 = vld [vmem:[%s4042_s3 + $0x8] sm:$0xff] }
0x1000   :  { %3103 = vmatprep.subr.mxu1 %v3289_v9 }
0x1001   :  { %3104 = vmatpush3.msra.mxu1 %v3526_v53  ;;  %v3861_v53 = vld [vmem:[%s4042_s3] sm:$0xff] }
0x1002   :  { %3119 = vmatprep.subr.mxu1 %v3289_v9 }
0x1015   :  { %v1759_v35 = vpop.permute.xlu0 %1758 }
0x1016   :  { %3073 = vmatmul.mubr.msk.f32.vlgmr.msra.gmra.mxu0 %vm242_vm2, %v1759_v35 }
0x1017   :  { %3087 = vmatpush3.msra.mxu0 %v3838_v46  ;;  %3094 = vmatprep.mubr.msk.f32.mxu0 %vm3291_vm1, %v3289_v9 }
0x1018   :  { %3088 = vmatprep.subr.mxu0 %v3289_v9 }
0x1019   :  { %3089 = vmatpush3.msra.mxu0 %v3847_v48 }
0x101a   :  { %3090 = vmatprep.subr.mxu0 %v3289_v9 }
0x101b   :  { %3091 = vmatpush3.msra.mxu0 %v3854_v51 }
0x101c   :  { %3092 = vmatprep.subr.mxu0 %v3289_v9 }
0x101d   :  { %3093 = vmatpush3.msra.mxu0 %v3861_v53 }
0x101e   :  { %3095 = vmatmul.mubr.msk.f32.vlgmr.msra.gmra.mxu0 %vm242_vm2, %v1759_v35  ;;  %3108 = vmatprep.subr.mxu0 %v3289_v9 }
0x101f   :  { %3109 = vmatpush3.msra.mxu0 %v3869_v36  ;;  %3116 = vmatprep.mubr.msk.f32.mxu0 %vm3291_vm1, %v3289_v9 }
0x1020   :  { %3110 = vmatprep.subr.mxu0 %v3289_v9 }
0x1021   :  { %3111 = vmatpush3.msra.mxu0 %v3878_v37 }
0x1022   :  { %3112 = vmatprep.subr.mxu0 %v3289_v9 }
0x1023   :  { %3113 = vmatpush3.msra.mxu0 %v3885_v38 }
0x1024   :  { %3114 = vmatprep.subr.mxu0 %v3289_v9 }
0x1025   :  { %3115 = vmatpush3.msra.mxu0 %v3892_v39 }
0x1026   :  { %3130 = vmatprep.subr.mxu0 %v3289_v9 }
0x10ba   :  { %v1900_v40 = vpop.f32.mrf.mxu1 }
0x10bb   :  { %v1913_v41 = vadd.f32 %v1900_v40, %v3560_v11 }
0x10bc   :  { %v3085_v42 = vpop.f32.mrf.mxu1 }
0x10bd   :  { %1915 = vrot.lane.b32.xlu1 %v1913_v41, %s3290_s5 }
0x10d6   :  { %v1828_v43 = vpop.f32.mrf.mxu0 }
0x10d7   :  { %v1904_v7 = vadd.f32 %v1900_v40, %v1828_v43  ;;  %v1912_v4 = vadd.f32 %v1828_v43, %v3555_v3  ;;  %v2221_v43 = vld [vmem:[#allocation2 + $0x38] sm:$0xff] }
0x10d8   :  { %v3074_v54 = vpop.f32.mrf.mxu0 }
0x10d9   :  { %v1905_v10 = vadd.f32 %v1904_v7, %v3553_v2 }
0x10db   :  { %v2709_v12 = vmul.f32 -1.442695, %v1905_v10 }
0x10dd   :  { %3247 = vpow2.f32 %v2709_v12 }
0x10de   :  { %v2007_v55 = vpop.f32.mrf.mxu0 }
0x10df   :  { %v2018_v56 = vadd.f32 %v2007_v55, %v3450_v27  ;;  %v2011_v45 = vadd.f32 %v2007_v55, %v1940_v58 }
0x10e0   :  { %v3096_v52 = vpop.f32.mrf.mxu0 }
0x10e1   :  { %2020 = vrot.lane.b32.xlu0 %v2018_v56, %s3290_s5  ;;  %v2711_v59 = vmul.f32 -1.442695, %v2011_v45 }
0x10ea   :  { %v3248_v13 = vpop.eup %3247 }
0x10eb   :  { %v1909_v44 = vadd.f32 1.0, %v3248_v13 }
0x10ed   :  { %3249 = vrcp.f32 %v1909_v44 }
0x10ee   :  { %3251 = vpow2.f32 %v2711_v59 }
0x10fa   :  { %v3250_v47 = vpop.eup %3249 }
0x10fb   :  { %v3252_v57 = vpop.eup %3251  ;;  %v1925_v16 = vsub.f32 1.0, %v3250_v47  ;;  %v1931_v18 = vmul.f32 %v3250_v47, %v3813_v28  ;;  %v3286_v28 = vld [vmem:[%s4047_s6 + $0x10] sm:$0xff] }
0x10fc   :  { %v2015_v61 = vadd.f32 1.0, %v3252_v57 }
0x10fe   :  { %3253 = vrcp.f32 %v2015_v61 }
0x110b   :  { %v3254_v63 = vpop.eup %3253 }
0x110c   :  { %v2030_v20 = vsub.f32 1.0, %v3254_v63  ;;  %v2036_v22 = vmul.f32 %v3254_v63, %v3818_v33 }
0x112f   :  { %v1916_v60 = vpop.permute.xlu1 %1915 }
0x1130   :  { %v1918_v49 = vmul.f32 %v3250_v47, %v1916_v60  ;;  %v2516_v60 = vld [vmem:[%s4050_s10 + $0x18] sm:$0xff] }
0x1132   :  { %1920 = vrot.lane.b32.xlu1 %v1918_v49, %s3290_s5 }
0x1153   :  { %v2021_v1 = vpop.permute.xlu0 %2020 }
0x1154   :  { %v2023_v62 = vmul.f32 %v3254_v63, %v2021_v1 }
0x1156   :  { %2025 = vrot.lane.b32.xlu0 %v2023_v62, %s3290_s5 }
0x11a4   :  { %v1921_v5 = vpop.permute.xlu1 %1920 }
0x11a5   :  { %v1923_v50 = vadd.f32 %v1921_v5, %v1912_v4 }
0x11a7   :  { %3255 = vtanh.f32 %v1923_v50 }
0x11b4   :  { %v3256_v0 = vpop.eup %3255 }
0x11b5   :  { %1927 = vrot.lane.b32.xlu1 %v3256_v0, %s3293_s20 }
0x11c8   :  { %v2026_v6 = vpop.permute.xlu0 %2025 }
0x11c9   :  { %v2028_v8 = vadd.f32 %v2026_v6, %v1940_v58 }
0x11cb   :  { %3257 = vtanh.f32 %v2028_v8 }
0x11d8   :  { %v3258_v14 = vpop.eup %3257 }
0x11d9   :  { %2032 = vrot.lane.b32.xlu0 %v3258_v14, %s3293_s20  ;;  %v2515_v14 = vld [vmem:[%s4050_s10 + $0x10] sm:$0xff] }
0x1227   :  { %v1928_v17 = vpop.permute.xlu1 %1927 }
0x1228   :  { %v1930_v15 = vmul.f32 %v1928_v17, %v1925_v16  ;;  %v2505_v16 = vld [vmem:[#allocation3] sm:$0xff]  ;;  %v2514_v17 = vld [vmem:[%s4050_s10 + $0x8] sm:$0xff] }
0x122a   :  { %v3907_v19 = vadd.f32 %v1931_v18, %v1930_v15  ;;  %v2513_v18 = vld [vmem:[%s4050_s10] sm:$0xff]  ;;  %v2506_v15 = vld [vmem:[#allocation3 + $0x8] sm:$0xff] }
0x122c   :  { %1934 = vrot.lane.b32.xlu1 %v3907_v19, %s3293_s20 }
0x124b   :  { %v2033_v21 = vpop.permute.xlu0 %2032 }
0x124c   :  { %v2035_v23 = vmul.f32 %v2033_v21, %v2030_v20  ;;  %v2508_v20 = vld [vmem:[#allocation3 + $0x18] sm:$0xff]  ;;  %v2509_v21 = vld [vmem:[#allocation3 + $0x20] sm:$0xff] }
0x124e   :  { %v3912_v24 = vadd.f32 %v2036_v22, %v2035_v23 }
0x1250   :  { %2039 = vrot.lane.b32.xlu0 %v3912_v24, %s3293_s20 }
0x129e   :  { %v1935_v25 = vpop.permute.xlu1 %1934 }
0x129f   :  { %1938 = vst.msk [vmem:[#allocation3 + $0x28] sm:$0xff] %vm242_vm2, %v1935_v25  ;;  %3117 = vmatmul.mubr.msk.f32.vlgmr.msra.gmra.mxu0 %vm242_vm2, %v1935_v25 }
0x12a0   :  { %3131 = vmatpush3.msra.mxu0 %v3285_v26  ;;  %3138 = vmatprep.mubr.msk.f32.mxu0 %vm3291_vm1, %v3289_v9 }
0x12a1   :  { %3132 = vmatprep.subr.mxu0 %v3289_v9 }
0x12a2   :  { %3133 = vmatpush3.msra.mxu0 %v3286_v28 }
0x12a3   :  { %3134 = vmatprep.subr.mxu0 %v3289_v9 }
0x12a4   :  { %3135 = vmatpush3.msra.mxu0 %v3287_v29 }
0x12a5   :  { %3136 = vmatprep.subr.mxu0 %v3289_v9 }
0x12a6   :  { %3137 = vmatpush3.msra.mxu0 %v3288_v30  ;;  %v2510_v22 = vld [vmem:[#allocation3 + $0x28] sm:$0xff]  ;;  %v2721_v30 = vld [vmem:[%s4052_s11] ss:$0 sm:$0xff] }
0x12a7   :  { %3152 = vmatprep.subr.mxu0 %v2516_v60 }
0x12c2   :  { %v2040_v31 = vpop.permute.xlu0 %2039 }
0x12c3   :  { %3106 = vmatmul.mubr.msk.f32.vlgmr.msra.gmra.mxu1 %vm242_vm2, %v2040_v31 }
0x12c4   :  { %3120 = vmatpush3.msra.mxu1 %v3838_v46  ;;  %3127 = vmatprep.mubr.msk.f32.mxu1 %vm3291_vm1, %v3289_v9 }
0x12c5   :  { %3121 = vmatprep.subr.mxu1 %v3289_v9 }
0x12c6   :  { %3122 = vmatpush3.msra.mxu1 %v3847_v48 }
0x12c7   :  { %3123 = vmatprep.subr.mxu1 %v3289_v9 }
0x12c8   :  { %3124 = vmatpush3.msra.mxu1 %v3854_v51 }
0x12c9   :  { %3125 = vmatprep.subr.mxu1 %v3289_v9 }
0x12ca   :  { %3126 = vmatpush3.msra.mxu1 %v3861_v53 }
0x12cb   :  { %3128 = vmatmul.mubr.msk.f32.vlgmr.msra.gmra.mxu1 %vm242_vm2, %v2040_v31  ;;  %3141 = vmatprep.subr.mxu1 %v3289_v9 }
0x12cc   :  { %3142 = vmatpush3.msra.mxu1 %v3869_v36  ;;  %3149 = vmatprep.mubr.msk.f32.mxu1 %vm3291_vm1, %v3289_v9 }
0x12cd   :  { %3143 = vmatprep.subr.mxu1 %v3289_v9 }
0x12ce   :  { %3144 = vmatpush3.msra.mxu1 %v3878_v37 }
0x12cf   :  { %3145 = vmatprep.subr.mxu1 %v3289_v9 }
0x12d0   :  { %3146 = vmatpush3.msra.mxu1 %v3885_v38 }
0x12d1   :  { %3147 = vmatprep.subr.mxu1 %v3289_v9 }
0x12d2   :  { %3148 = vmatpush3.msra.mxu1 %v3892_v39 }
0x135f   :  { %v2181_v32 = vpop.f32.mrf.mxu0 }
0x1360   :  { %v2194_v33 = vadd.f32 %v2181_v32, %v3560_v11 }
0x1361   :  { %v3118_v34 = vpop.f32.mrf.mxu0 }
0x1362   :  { %2196 = vrot.lane.b32.xlu1 %v2194_v33, %s3290_s5 }
0x1383   :  { %v2109_v35 = vpop.f32.mrf.mxu1 }
0x1384   :  { %v2185_v36 = vadd.f32 %v2181_v32, %v2109_v35  ;;  %v2193_v12 = vadd.f32 %v2109_v35, %v3555_v3 }
0x1385   :  { %v3107_v46 = vpop.f32.mrf.mxu1 }
0x1386   :  { %v2186_v37 = vadd.f32 %v2185_v36, %v3553_v2 }
0x1388   :  { %v2714_v9 = vmul.f32 -1.442695, %v2186_v37 }
0x138a   :  { %3259 = vpow2.f32 %v2714_v9 }
0x138b   :  { %v2288_v48 = vpop.f32.mrf.mxu1 }
0x138c   :  { %v2299_v51 = vadd.f32 %v2288_v48, %v3450_v27  ;;  %v2292_v54 = vadd.f32 %v2288_v48, %v2221_v43 }
0x138d   :  { %v3129_v53 = vpop.f32.mrf.mxu1 }
0x138e   :  { %2301 = vrot.lane.b32.xlu0 %v2299_v51, %s3290_s5  ;;  %v2716_v55 = vmul.f32 -1.442695, %v2292_v54 }
0x1397   :  { %v3260_v38 = vpop.eup %3259 }
0x1398   :  { %v2190_v39 = vadd.f32 1.0, %v3260_v38 }
0x139a   :  { %3261 = vrcp.f32 %v2190_v39 }
0x139b   :  { %3263 = vpow2.f32 %v2716_v55 }
0x13a7   :  { %v3262_v40 = vpop.eup %3261 }
0x13a8   :  { %v3264_v27 = vpop.eup %3263  ;;  %v2206_v49 = vsub.f32 1.0, %v3262_v40  ;;  %v2212_v61 = vmul.f32 %v3262_v40, %v3907_v19  ;;  %v2507_v19 = vld [vmem:[#allocation3 + $0x10] sm:$0xff] }
0x13a9   :  { %v2296_v56 = vadd.f32 1.0, %v3264_v27 }
0x13ab   :  { %3265 = vrcp.f32 %v2296_v56 }
0x13b8   :  { %v3266_v52 = vpop.eup %3265 }
0x13b9   :  { %v2311_v62 = vsub.f32 1.0, %v3266_v52  ;;  %v2317_v5 = vmul.f32 %v3266_v52, %v3912_v24 }
0x13d4   :  { %v2197_v41 = vpop.permute.xlu1 %2196 }
0x13d5   :  { %v2199_v42 = vmul.f32 %v3262_v40, %v2197_v41 }
0x13d7   :  { %2201 = vrot.lane.b32.xlu1 %v2199_v42, %s3290_s5 }
0x1400   :  { %v2302_v7 = vpop.permute.xlu0 %2301 }
0x1401   :  { %v2304_v10 = vmul.f32 %v3266_v52, %v2302_v7 }
0x1403   :  { %2306 = vrot.lane.b32.xlu0 %v2304_v10, %s3290_s5 }
0x1449   :  { %v2202_v13 = vpop.permute.xlu1 %2201 }
0x144a   :  { %v2204_v44 = vadd.f32 %v2202_v13, %v2193_v12 }
0x144c   :  { %3267 = vtanh.f32 %v2204_v44 }
0x1459   :  { %v3268_v58 = vpop.eup %3267 }
0x145a   :  { %2208 = vrot.lane.b32.xlu1 %v3268_v58, %s3293_s20 }
0x1475   :  { %v2307_v45 = vpop.permute.xlu0 %2306 }
0x1476   :  { %v2309_v59 = vadd.f32 %v2307_v45, %v2221_v43 }
0x1478   :  { %3269 = vtanh.f32 %v2309_v59 }
0x1485   :  { %v3270_v47 = vpop.eup %3269 }
0x1486   :  { %2313 = vrot.lane.b32.xlu0 %v3270_v47, %s3293_s20 }
0x14cc   :  { %v2209_v57 = vpop.permute.xlu1 %2208 }
0x14cd   :  { %v2211_v63 = vmul.f32 %v2209_v57, %v2206_v49 }
0x14cf   :  { %v3970_v1 = vadd.f32 %v2212_v61, %v2211_v63 }
0x14d1   :  { %2215 = vrot.lane.b32.xlu1 %v3970_v1, %s3293_s20 }
0x14f8   :  { %v2314_v4 = vpop.permute.xlu0 %2313 }
0x14f9   :  { %v2316_v50 = vmul.f32 %v2314_v4, %v2311_v62 }
0x14fb   :  { %v2318_v0 = vadd.f32 %v2317_v5, %v2316_v50 }
0x14fd   :  { %2320 = vrot.lane.b32.xlu0 %v2318_v0, %s3293_s20 }
0x1543   :  { %v2216_v6 = vpop.permute.xlu1 %2215 }
0x1544   :  { %2219 = vst.msk [vmem:[#allocation3 + $0x30] sm:$0xff] %vm242_vm2, %v2216_v6  ;;  %3150 = vmatmul.mubr.msk.f32.vlgmr.msra.gmra.mxu1 %vm242_vm2, %v2216_v6 }
0x154b   :  { %v2511_v23 = vld [vmem:[#allocation3 + $0x30] sm:$0xff] }
0x156f   :  { %v2321_v8 = vpop.permute.xlu0 %2320 }
0x1570   :  { %2502 = vst.msk [vmem:[%s4051_s13] sm:$0xff] %vm242_vm2, %v2321_v8  ;;  %3139 = vmatmul.mubr.msk.f32.vlgmr.msra.gmra.mxu0 %vm242_vm2, %v2321_v8 }
0x1571   :  { %3153 = vmatpush3.msra.mxu0 %v2516_v60  ;;  %3160 = vmatprep.mubr.msk.f32.mxu0 %vm242_vm2, %v2505_v16 }
0x1572   :  { %3154 = vmatprep.subr.mxu0 %v2515_v14 }
0x1573   :  { %3155 = vmatpush3.msra.mxu0 %v2515_v14 }
0x1574   :  { %3156 = vmatprep.subr.mxu0 %v2514_v17 }
0x1575   :  { %3157 = vmatpush3.msra.mxu0 %v2514_v17 }
0x1576   :  { %3158 = vmatprep.subr.mxu0 %v2513_v18 }
0x1577   :  { %3159 = vmatpush3.msra.mxu0 %v2513_v18 }
0x1578   :  { %3161 = vmatmul.mubr.msk.f32.vlgmr.msra.gmra.mxu0 %vm242_vm2, %v2506_v15 }
0x1579   :  { %3163 = vmatprep.mubr.msk.f32.mxu0 %vm242_vm2, %v2507_v19 }
0x157c   :  { %3164 = vmatmul.mubr.msk.f32.gmra.mxu0 %vm242_vm2, %v2508_v20 }
0x157d   :  { %3166 = vmatprep.mubr.msk.f32.mxu0 %vm242_vm2, %v2509_v21 }
0x1580   :  { %3167 = vmatmul.mubr.msk.f32.gmra.mxu0 %vm242_vm2, %v2510_v22 }
0x1581   :  { %3169 = vmatprep.mubr.msk.f32.mxu0 %vm242_vm2, %v2511_v23 }
0x1604   :  { %v2462_v24 = vpop.f32.mrf.mxu1 }
0x1605   :  { %v2475_v25 = vadd.f32 %v2462_v24, %v3560_v11 }
0x1606   :  { %v3151_v26 = vpop.f32.mrf.mxu1 }
0x1607   :  { %2477 = vrot.lane.b32.xlu1 %v2475_v25, %s3290_s5 }
0x1630   :  { %v2390_v28 = vpop.f32.mrf.mxu0 }
0x1631   :  { %v2466_v9 = vadd.f32 %v2462_v24, %v2390_v28  ;;  %v2474_v55 = vadd.f32 %v2390_v28, %v3555_v3 }
0x1632   :  { %v3140_v29 = vpop.f32.mrf.mxu0 }
0x1633   :  { %v2467_v38 = vadd.f32 %v2466_v9, %v3553_v2 }
0x1635   :  { %v2719_v39 = vmul.f32 -1.442695, %v2467_v38 }
0x1637   :  { %3271 = vpow2.f32 %v2719_v39 }
0x1638   :  { %v3162_v31 = vpop.f32.mrf.mxu0 }
0x1639   :  { %v2620_v32 = vadd.f32 %v3162_v31, %v2721_v30 }
0x163a   :  { %v2614_v33 = vpop.f32.mrf.mxu0 }
0x163b   :  { %2654 = vst [vmem:[%s4053_s12 + $0x8] sm:$0xff] %v2620_v32  ;;  %v2615_v34 = vadd.f32 %v2721_v30, %v2614_v33 }
0x163c   :  { %v3165_v35 = vpop.f32.mrf.mxu0 }
0x163d   :  { %2653 = vst [vmem:[%s4053_s12] sm:$0xff] %v2615_v34  ;;  %v2630_v11 = vadd.f32 %v3165_v35, %v2721_v30 }
0x163e   :  { %v2624_v46 = vpop.f32.mrf.mxu0 }
0x163f   :  { %2656 = vst [vmem:[%s4053_s12 + $0x18] sm:$0xff] %v2630_v11  ;;  %v2625_v48 = vadd.f32 %v2721_v30, %v2624_v46 }
0x1640   :  { %v3168_v51 = vpop.f32.mrf.mxu0 }
0x1641   :  { %2655 = vst [vmem:[%s4053_s12 + $0x10] sm:$0xff] %v2625_v48  ;;  %v2640_v53 = vadd.f32 %v3168_v51, %v2721_v30 }
0x1642   :  { %v2634_v36 = vpop.f32.mrf.mxu0 }
0x1643   :  { %2658 = vst [vmem:[%s4053_s12 + $0x28] sm:$0xff] %v2640_v53  ;;  %v2635_v37 = vadd.f32 %v2721_v30, %v2634_v36 }
0x1644   :  { %v3272_v40 = vpop.eup %3271 }
0x1645   :  { %2657 = vst [vmem:[%s4053_s12 + $0x20] sm:$0xff] %v2635_v37  ;;  %v2471_v41 = vadd.f32 1.0, %v3272_v40 }
0x1647   :  { %3273 = vrcp.f32 %v2471_v41 }
0x1654   :  { %v3274_v42 = vpop.eup %3273 }
0x1655   :  { %v2487_v7 = vsub.f32 1.0, %v3274_v42  ;;  %v2493_v10 = vmul.f32 %v3274_v42, %v3970_v1 }
0x1679   :  { %v2478_v43 = vpop.permute.xlu1 %2477 }
0x167a   :  { %v2480_v54 = vmul.f32 %v3274_v42, %v2478_v43 }
0x167c   :  { %2482 = vrot.lane.b32.xlu0 %v2480_v54, %s3290_s5 }
0x16ee   :  { %v2483_v27 = vpop.permute.xlu0 %2482 }
0x16ef   :  { %v2485_v56 = vadd.f32 %v2483_v27, %v2474_v55 }
0x16f1   :  { %3275 = vtanh.f32 %v2485_v56 }
0x16fe   :  { %v3276_v52 = vpop.eup %3275 }
0x16ff   :  { %2489 = vrot.lane.b32.xlu1 %v3276_v52, %s3293_s20 }
0x1771   :  { %v2490_v2 = vpop.permute.xlu1 %2489 }
0x1772   :  { %v2492_v12 = vmul.f32 %v2490_v2, %v2487_v7 }
0x1774   :  { %v2494_v13 = vadd.f32 %v2493_v10, %v2492_v12 }
0x1776   :  { %2496 = vrot.lane.b32.xlu0 %v2494_v13, %s3293_s20 }
0x17e8   :  { %v2497_v44 = vpop.permute.xlu0 %2496 }
0x17e9   :  { %2500 = vst.msk [vmem:[#allocation3 + $0x38] sm:$0xff] %vm242_vm2, %v2497_v44  ;;  %2720 = vst.msk [vmem:[%s4051_s13 + $0x8] sm:$0xff] %vm242_vm2, %v2497_v44 }
0x17f0   :  { %v2512_v3 = vld [vmem:[#allocation3 + $0x38] sm:$0xff] }
0x17f1   :  { %3170 = vmatmul.mubr.msk.f32.gmra.mxu0 %vm242_vm2, %v2512_v3 }
0x18b1   :  { %v3171_v58 = vpop.f32.mrf.mxu0 }
0x18b2   :  { %v2650_v45 = vadd.f32 %v3171_v58, %v2721_v30 }
0x18b3   :  { %v2644_v59 = vpop.f32.mrf.mxu0 }
0x18b4   :  { %2660 = vst [vmem:[%s4053_s12 + $0x38] sm:$0xff] %v2650_v45  ;;  %v2645_v47 = vadd.f32 %v2721_v30, %v2644_v59 }
0x18b6   :  { %2659 = vst [vmem:[%s4053_s12 + $0x30] sm:$0xff] %v2645_v47 }

</bundles_post_ra>
